<compile_context>
chip_gen: v7x
topology: tpu7x:2x2x1
jax: 0.10.0
libtpu: 0.0.40
codegen_flags: <defaults>
</compile_context>

<pallas_src>
import functools
from functools import partial

import numpy as np
import jax
import jax.numpy as jnp
from jax.experimental import pallas as pl
from jax.experimental.pallas import tpu as pltpu

SAMPLE_RATE = 16000
N_FFT = 1024
WIN_LENGTH = 1024
HOP_LENGTH = 256
N_MELS = 64
N_FREQS = N_FFT // 2 + 1       # 513 one-sided bins
F_DIM = 512                    # Nyquist bin dropped (zero mel weight); 4 x 128 lanes
MEL_PAD = 128                  # lane-dense output width (cols 64..127 are zero padding)
LOG_CLAMP = 1e-5


def _round_up(x, m):
    return (x + m - 1) // m * m


# ----------------------------- constant setup (host, cached) -----------------------------
def _hz_to_mel(f):
    return 2595.0 * np.log10(1.0 + f / 700.0)


def _mel_to_hz(m):
    return 700.0 * (10.0 ** (m / 2595.0) - 1.0)


def _make_mel_fbank(n_freqs, n_mels, sr, f_min=0.0, f_max=None):
    """torchaudio.functional.melscale_fbanks, htk scale, norm=None."""
    if f_max is None:
        f_max = sr / 2.0
    all_freqs = np.linspace(0.0, sr // 2, n_freqs)
    m_pts = np.linspace(_hz_to_mel(f_min), _hz_to_mel(f_max), n_mels + 2)
    f_pts = _mel_to_hz(m_pts)
    f_diff = f_pts[1:] - f_pts[:-1]                       # (n_mels+1,)
    slopes = f_pts[None, :] - all_freqs[:, None]          # (n_freqs, n_mels+2)
    down = -slopes[:, :-2] / f_diff[:-1]
    up = slopes[:, 2:] / f_diff[1:]
    fb = np.maximum(0.0, np.minimum(down, up))
    return fb.astype(np.float32)                          # (n_freqs, n_mels)


@functools.lru_cache(maxsize=None)
def _constants():
    """Window-folded DFT matrices (f32 numpy; cast to bf16 on device) + padded mel fbank."""
    n = np.arange(N_FFT, dtype=np.float64)
    # torch.hann_window(N, periodic=True)
    win = 0.5 - 0.5 * np.cos(2.0 * np.pi * n / N_FFT)

    k = np.arange(F_DIM, dtype=np.float64)                # bins 0..511 (Nyquist dropped)
    ang = 2.0 * np.pi * np.outer(n, k) / N_FFT            # (N_FFT, F_DIM)
    ccos = (win[:, None] * np.cos(ang)).astype(np.float32)
    csin = (win[:, None] * np.sin(ang)).astype(np.float32)

    fb = _make_mel_fbank(N_FREQS, N_MELS, SAMPLE_RATE)    # (513, 64)
    # Dropping the Nyquist bin is only valid because its mel weight is ~0
    # (f_max = sr/2, htk, norm=None).  Verify numerically.
    assert float(np.abs(fb[N_FREQS - 1]).max()) < 1e-6
    melw = np.zeros((F_DIM, MEL_PAD), np.float32)
    melw[:, :N_MELS] = fb[:F_DIM]
    return ccos, csin, melw


# ----------------------------- Pallas kernel -----------------------------
def _mel_kernel(frames_ref, cos_ref, sin_ref, mel_ref, out_ref):
    # frames_ref: (TM, N_FFT) bf16  (window already folded into cos/sin)
    fr = frames_ref[...]
    re = jnp.dot(fr, cos_ref[...], preferred_element_type=jnp.float32)   # (TM, F_DIM)
    im = jnp.dot(fr, sin_ref[...], preferred_element_type=jnp.float32)   # (TM, F_DIM)
    power = re * re + im * im                                            # |X|^2 (power=2.0)
    mel = jnp.dot(power, mel_ref[...], preferred_element_type=jnp.float32)  # (TM, MEL_PAD)
    out_ref[...] = jnp.log(jnp.maximum(mel, LOG_CLAMP))                  # apply_compression


@partial(jax.jit, static_argnames=("tile_m",))
def featurizer_pallas(x, tile_m=256):
    """x: (B, L) float32 waveform -> (B, N_MELS, T) log-mel spectrogram."""
    B, L = x.shape
    pad = N_FFT // 2
    T = L // HOP_LENGTH + 1

    # center=True reflect padding + framing (glue, cheap gather); frames in bf16
    # so the only streaming HBM input is 2 bytes/sample-of-frame.
    xp = jnp.pad(x, ((0, 0), (pad, pad)), mode="reflect")
    idx = np.arange(T)[:, None] * HOP_LENGTH + np.arange(N_FFT)[None, :]
    frames = xp[:, idx].astype(jnp.bfloat16).reshape(B * T, N_FFT)       # (B*T, N_FFT)

    BT = B * T
    tm = min(tile_m, _round_up(BT, 16))
    rows = _round_up(BT, tm)
    if rows != BT:
        frames = jnp.pad(frames, ((0, rows - BT), (0, 0)))

    ccos_np, csin_np, melw_np = _constants()
    ccos = jnp.asarray(ccos_np, dtype=jnp.bfloat16)
    csin = jnp.asarray(csin_np, dtype=jnp.bfloat16)
    melw = jnp.asarray(melw_np)                                          # f32

    out = pl.pallas_call(
        _mel_kernel,
        out_shape=jax.ShapeDtypeStruct((rows, MEL_PAD), jnp.float32),
        grid_spec=pltpu.PrefetchScalarGridSpec(
            num_scalar_prefetch=0,
            grid=(rows // tm,),
            in_specs=[
                pl.BlockSpec((tm, N_FFT), lambda i: (i, 0)),
                pl.BlockSpec((N_FFT, F_DIM), lambda i: (0, 0)),
                pl.BlockSpec((N_FFT, F_DIM), lambda i: (0, 0)),
                pl.BlockSpec((F_DIM, MEL_PAD), lambda i: (0, 0)),
            ],
            out_specs=pl.BlockSpec((tm, MEL_PAD), lambda i: (i, 0)),
        ),
        compiler_params=pltpu.CompilerParams(
            dimension_semantics=("parallel",),
            vmem_limit_bytes=48 * 1024 * 1024,
        ),
    )(frames, ccos, csin, melw)

    logmel = out[:BT, :N_MELS].reshape(B, T, N_MELS)
    # torchaudio returns (..., n_mels, time)
    return jnp.transpose(logmel, (0, 2, 1))


# ----------------------------- reference (pure JAX, same precision) -----------------------------
def featurizer_ref(x):
    """Same algorithm / same bf16 DFT precision in plain XLA; validates the Pallas kernel.

    Note: relative to an exact-f32 torchaudio MelSpectrogram the bf16 DFT adds
    ~1% relative error on the power spectrum (well inside typical feature tolerances).
    """
    B, L = x.shape
    pad = N_FFT // 2
    T = L // HOP_LENGTH + 1
    xp = jnp.pad(x, ((0, 0), (pad, pad)), mode="reflect")
    idx = np.arange(T)[:, None] * HOP_LENGTH + np.arange(N_FFT)[None, :]
    frames = xp[:, idx].astype(jnp.bfloat16)                             # (B, T, N_FFT)

    ccos_np, csin_np, melw_np = _constants()
    ccos = jnp.asarray(ccos_np, dtype=jnp.bfloat16)
    csin = jnp.asarray(csin_np, dtype=jnp.bfloat16)
    melw = jnp.asarray(melw_np[:, :N_MELS])                              # (F_DIM, N_MELS) f32

    re = jnp.einsum("btn,nf->btf", frames, ccos, preferred_element_type=jnp.float32)
    im = jnp.einsum("btn,nf->btf", frames, csin, preferred_element_type=jnp.float32)
    power = re * re + im * im
    mel = jnp.einsum("btf,fm->btm", power, melw, preferred_element_type=jnp.float32)
    out = jnp.log(jnp.maximum(mel, LOG_CLAMP))
    return jnp.transpose(out, (0, 2, 1))


if __name__ == "__main__":
    key = jax.random.PRNGKey(0)
    B, L = 2, 4096                                    # 2 waveforms of 4096 samples
    x = jax.random.normal(key, (B, L), dtype=jnp.float32) * 0.1

    out = jax.block_until_ready(featurizer_pallas(x))

    expected_T = L // HOP_LENGTH + 1
    assert out.shape == (B, N_MELS, expected_T), out.shape
    assert out.dtype == jnp.float32

    ref = jax.block_until_ready(featurizer_ref(x))
    np.testing.assert_allclose(np.asarray(out), np.asarray(ref), rtol=2e-2, atol=2e-2)

    print("KERNEL_OK")
</pallas_src>

<mosaic_0001>
module attributes {stable_mosaic.version = 11 : i64} {
  func.func @_mel_kernel(%arg0: i32, %arg1: memref<48x1024xbf16, #tpu.memory_space<vmem>>, %arg2: memref<1024x512xbf16, #tpu.memory_space<vmem>>, %arg3: memref<1024x512xbf16, #tpu.memory_space<vmem>>, %arg4: memref<512x128xf32, #tpu.memory_space<vmem>>, %arg5: memref<48x128xf32, #tpu.memory_space<vmem>>) attributes {dimension_semantics = [#tpu.dimension_semantics<parallel>], iteration_bounds = array<i64: 1>, scalar_prefetch = 0 : i64, scratch_operands = 0 : i64, tpu.core_type = #tpu.core_type<tc>, window_params = [{transform_indices = @transform_0, window_bounds = array<i64: 48, 1024>}, {pipeline_mode = #tpu.pipeline_mode<synchronous>, transform_indices = @transform_1, window_bounds = array<i64: 1024, 512>}, {pipeline_mode = #tpu.pipeline_mode<synchronous>, transform_indices = @transform_2, window_bounds = array<i64: 1024, 512>}, {pipeline_mode = #tpu.pipeline_mode<synchronous>, transform_indices = @transform_3, window_bounds = array<i64: 512, 128>}, {transform_indices = @transform_4, window_bounds = array<i64: 48, 128>}]} {
    %c0 = arith.constant 0 : index
    %c0_0 = arith.constant 0 : index
    %0 = vector.load %arg1[%c0, %c0_0] : memref<48x1024xbf16, #tpu.memory_space<vmem>>, vector<48x1024xbf16>
    %c0_1 = arith.constant 0 : index
    %c0_2 = arith.constant 0 : index
    %1 = vector.load %arg2[%c0_1, %c0_2] : memref<1024x512xbf16, #tpu.memory_space<vmem>>, vector<1024x512xbf16>
    %cst = arith.constant dense<0.000000e+00> : vector<48x512xf32>
    %2 = tpu.matmul %0, %1, %cst {dimension_numbers = #tpu.dot_dimension_numbers<[1], [0], [0], [1], [0, 0, 1, 1], [], []>} : vector<48x1024xbf16>, vector<1024x512xbf16>, vector<48x512xf32> -> vector<48x512xf32>
    %c0_3 = arith.constant 0 : index
    %c0_4 = arith.constant 0 : index
    %3 = vector.load %arg3[%c0_3, %c0_4] : memref<1024x512xbf16, #tpu.memory_space<vmem>>, vector<1024x512xbf16>
    %cst_5 = arith.constant dense<0.000000e+00> : vector<48x512xf32>
    %4 = tpu.matmul %0, %3, %cst_5 {dimension_numbers = #tpu.dot_dimension_numbers<[1], [0], [0], [1], [0, 0, 1, 1], [], []>} : vector<48x1024xbf16>, vector<1024x512xbf16>, vector<48x512xf32> -> vector<48x512xf32>
    %5 = arith.mulf %2, %2 : vector<48x512xf32>
    %6 = arith.mulf %4, %4 : vector<48x512xf32>
    %7 = arith.addf %5, %6 : vector<48x512xf32>
    %c0_6 = arith.constant 0 : index
    %c0_7 = arith.constant 0 : index
    %8 = vector.load %arg4[%c0_6, %c0_7] : memref<512x128xf32, #tpu.memory_space<vmem>>, vector<512x128xf32>
    %cst_8 = arith.constant dense<0.000000e+00> : vector<48x128xf32>
    %9 = tpu.matmul %7, %8, %cst_8 {dimension_numbers = #tpu.dot_dimension_numbers<[1], [0], [0], [1], [0, 0, 1, 1], [], []>} : vector<48x512xf32>, vector<512x128xf32>, vector<48x128xf32> -> vector<48x128xf32>
    %cst_9 = arith.constant 9.99999974E-6 : f32
    %10 = vector.broadcast %cst_9 : f32 to vector<48x128xf32>
    %11 = arith.maximumf %9, %10 : vector<48x128xf32>
    %12 = math.log %11 : vector<48x128xf32>
    %c0_10 = arith.constant 0 : index
    %c0_11 = arith.constant 0 : index
    %13 = vector.load %arg5[%c0_10, %c0_11] : memref<48x128xf32, #tpu.memory_space<vmem>>, vector<48x128xf32>
    tpu.vector_store %arg5[%c0_10, %c0_11], %12 {strides = array<i32>} : memref<48x128xf32, #tpu.memory_space<vmem>>, vector<48x128xf32>,
    return
  }
  func.func @transform_0(%arg0: i32) -> (i32, i32) {
    %c0_i32 = arith.constant 0 : i32
    %c0_i32_0 = arith.constant 0 : i32
    return %arg0, %c0_i32 : i32, i32
  }
  func.func @transform_1(%arg0: i32) -> (i32, i32) {
    %c0_i32 = arith.constant 0 : i32
    %c0_i32_0 = arith.constant 0 : i32
    %c0_i32_1 = arith.constant 0 : i32
    return %c0_i32, %c0_i32_0 : i32, i32
  }
  func.func @transform_2(%arg0: i32) -> (i32, i32) {
    %c0_i32 = arith.constant 0 : i32
    %c0_i32_0 = arith.constant 0 : i32
    %c0_i32_1 = arith.constant 0 : i32
    return %c0_i32, %c0_i32_0 : i32, i32
  }
  func.func @transform_3(%arg0: i32) -> (i32, i32) {
    %c0_i32 = arith.constant 0 : i32
    %c0_i32_0 = arith.constant 0 : i32
    %c0_i32_1 = arith.constant 0 : i32
    return %c0_i32, %c0_i32_0 : i32, i32
  }
  func.func @transform_4(%arg0: i32) -> (i32, i32) {
    %c0_i32 = arith.constant 0 : i32
    %c0_i32_0 = arith.constant 0 : i32
    return %arg0, %c0_i32 : i32, i32
  }
}

</mosaic_0001>

<bundles_post_ra>
// kernel: featurizer_pallas.1
= control target key start
LH: loop header
LB: loop body
LE: loop exit
PB: predicated region body
PF: predicated region fallthrough
CT: control target
= control target key end

     0   :  { %s8326_s1 = inlined_call_operand.vmem [shape: bf16[1024,512], index: 1, kind: input, shape index: {}]   ;;  %s8327_s0 = inlined_call_operand.vmem [shape: bf16[48,1024], index: 0, kind: input, shape index: {}]   ;;  %s8328_s2 = inlined_call_operand.vmem [shape: bf16[1024,512], index: 2, kind: input, shape index: {}]   ;;  %s8329_s3 = inlined_call_operand.vmem [shape: f32[512,128], index: 3, kind: input, shape index: {}]   ;;  %s8330_s4 = inlined_call_operand.vmem [shape: f32[48,128], index: 4, kind: output, shape index: {}]  }
   0x1   :  { %v5439_v0 = vld [vmem:[%s8326_s1 + $0x4] ss:$16 sps:$4 sm:$0xff]   ;;  %v5441_v1 = vld [vmem:[%s8326_s1 + $0xc] ss:$16 sps:$4 sm:$0xff]   ;;  %v5443_v2 = vld [vmem:[%s8326_s1] ss:$16 sps:$4 sm:$0xff]  }
   0x2   :  { %1697 = vmatprep.subr.bf16.mxu0 %v5439_v0  ;;  %v5444_v3 = vld [vmem:[%s8326_s1 + $0x8] ss:$16 sps:$4 sm:$0xff]   ;;  %1949 = vmatprep.subr.bf16.mxu1 %v5441_v1  ;;  %v5445_v4 = vld [vmem:[%s8326_s1 + $0x24] ss:$16 sps:$4 sm:$0xff]   ;;  %v5447_v5 = vld [vmem:[%s8326_s1 + $0x2c] ss:$16 sps:$4 sm:$0xff]  }
   0x3   :  { %1698 = vmatpush1.bf16.msra.mxu0 %v5443_v2  ;;  %1950 = vmatpush1.bf16.msra.mxu1 %v5444_v3  ;;  %v5449_v6 = vld [vmem:[%s8326_s1 + $0x20] ss:$16 sps:$4 sm:$0xff]   ;;  %v5450_v7 = vld [vmem:[%s8326_s1 + $0x28] ss:$16 sps:$4 sm:$0xff]   ;;  %v5451_v8 = vld [vmem:[%s8326_s1 + $0x44] ss:$16 sps:$4 sm:$0xff]  }
   0x4   :  { %1699 = vmatprep.subr.bf16.mxu0 %v5445_v4  ;;  %1951 = vmatprep.subr.bf16.mxu1 %v5447_v5  ;;  %v5453_v9 = vld [vmem:[%s8326_s1 + $0x4c] ss:$16 sps:$4 sm:$0xff]   ;;  %v5455_v10 = vld [vmem:[%s8326_s1 + $0x40] ss:$16 sps:$4 sm:$0xff]   ;;  %v5456_v11 = vld [vmem:[%s8326_s1 + $0x48] ss:$16 sps:$4 sm:$0xff]  }
   0x5   :  { %v5457_v12 = vld [vmem:[%s8326_s1 + $0x64] ss:$16 sps:$4 sm:$0xff]   ;;  %v5459_v13 = vld [vmem:[%s8326_s1 + $0x6c] ss:$16 sps:$4 sm:$0xff]   ;;  %v5461_v14 = vld [vmem:[%s8326_s1 + $0x60] ss:$16 sps:$4 sm:$0xff]  }
   0x6   :  { %v5462_v15 = vld [vmem:[%s8326_s1 + $0x68] ss:$16 sps:$4 sm:$0xff]   ;;  %v5463_v16 = vld [vmem:[%s8326_s1 + $0x84] ss:$16 sps:$4 sm:$0xff]   ;;  %v5465_v17 = vld [vmem:[%s8326_s1 + $0x8c] ss:$16 sps:$4 sm:$0xff]  }
   0x7   :  { %1700 = vmatpush1.bf16.msra.mxu0 %v5449_v6  ;;  %1952 = vmatpush1.bf16.msra.mxu1 %v5450_v7  ;;  %v5467_v18 = vld [vmem:[%s8326_s1 + $0x80] ss:$16 sps:$4 sm:$0xff]   ;;  %v5468_v19 = vld [vmem:[%s8326_s1 + $0x88] ss:$16 sps:$4 sm:$0xff]   ;;  %v5469_v20 = vld [vmem:[%s8326_s1 + $0xa4] ss:$16 sps:$4 sm:$0xff]  }
   0x8   :  { %1701 = vmatprep.subr.bf16.mxu0 %v5451_v8  ;;  %1953 = vmatprep.subr.bf16.mxu1 %v5453_v9  ;;  %v5471_v21 = vld [vmem:[%s8326_s1 + $0xac] ss:$16 sps:$4 sm:$0xff]   ;;  %v5473_v22 = vld [vmem:[%s8326_s1 + $0xa0] ss:$16 sps:$4 sm:$0xff]   ;;  %v5474_v23 = vld [vmem:[%s8326_s1 + $0xa8] ss:$16 sps:$4 sm:$0xff]  }
   0x9   :  { %v5475_v24 = vld [vmem:[%s8326_s1 + $0xc4] ss:$16 sps:$4 sm:$0xff]   ;;  %v5477_v25 = vld [vmem:[%s8326_s1 + $0xcc] ss:$16 sps:$4 sm:$0xff]   ;;  %v5479_v26 = vld [vmem:[%s8326_s1 + $0xc0] ss:$16 sps:$4 sm:$0xff]  }
   0xa   :  { %v5480_v27 = vld [vmem:[%s8326_s1 + $0xc8] ss:$16 sps:$4 sm:$0xff]   ;;  %v5481_v28 = vld [vmem:[%s8326_s1 + $0xe4] ss:$16 sps:$4 sm:$0xff]   ;;  %v5483_v29 = vld [vmem:[%s8326_s1 + $0xec] ss:$16 sps:$4 sm:$0xff]  }
   0xb   :  { %1702 = vmatpush1.bf16.msra.mxu0 %v5455_v10  ;;  %1954 = vmatpush1.bf16.msra.mxu1 %v5456_v11  ;;  %v5485_v30 = vld [vmem:[%s8326_s1 + $0xe0] ss:$16 sps:$4 sm:$0xff]   ;;  %v5486_v31 = vld [vmem:[%s8326_s1 + $0xe8] ss:$16 sps:$4 sm:$0xff]   ;;  %v5487_v32 = vld [vmem:[%s8326_s1 + $0x104] ss:$16 sps:$4 sm:$0xff]  }
   0xc   :  { %1703 = vmatprep.subr.bf16.mxu0 %v5457_v12  ;;  %1955 = vmatprep.subr.bf16.mxu1 %v5459_v13  ;;  %v5489_v33 = vld [vmem:[%s8326_s1 + $0x10c] ss:$16 sps:$4 sm:$0xff]   ;;  %v5491_v34 = vld [vmem:[%s8326_s1 + $0x100] ss:$16 sps:$4 sm:$0xff]   ;;  %v5492_v35 = vld [vmem:[%s8326_s1 + $0x108] ss:$16 sps:$4 sm:$0xff]  }
   0xd   :  { %v5493_v36 = vld [vmem:[%s8326_s1 + $0x124] ss:$16 sps:$4 sm:$0xff]   ;;  %v5495_v37 = vld [vmem:[%s8326_s1 + $0x12c] ss:$16 sps:$4 sm:$0xff]   ;;  %v5497_v38 = vld [vmem:[%s8326_s1 + $0x120] ss:$16 sps:$4 sm:$0xff]  }
   0xe   :  { %v5498_v39 = vld [vmem:[%s8326_s1 + $0x128] ss:$16 sps:$4 sm:$0xff]   ;;  %v5499_v40 = vld [vmem:[%s8326_s1 + $0x144] ss:$16 sps:$4 sm:$0xff]   ;;  %v5501_v41 = vld [vmem:[%s8326_s1 + $0x14c] ss:$16 sps:$4 sm:$0xff]  }
   0xf   :  { %1704 = vmatpush1.bf16.msra.mxu0 %v5461_v14  ;;  %1956 = vmatpush1.bf16.msra.mxu1 %v5462_v15  ;;  %v5503_v42 = vld [vmem:[%s8326_s1 + $0x140] ss:$16 sps:$4 sm:$0xff]   ;;  %v5504_v43 = vld [vmem:[%s8326_s1 + $0x148] ss:$16 sps:$4 sm:$0xff]   ;;  %v5505_v44 = vld [vmem:[%s8326_s1 + $0x164] ss:$16 sps:$4 sm:$0xff]  }
  0x10   :  { %1705 = vmatprep.subr.bf16.mxu0 %v5463_v16  ;;  %1957 = vmatprep.subr.bf16.mxu1 %v5465_v17  ;;  %v5507_v45 = vld [vmem:[%s8326_s1 + $0x16c] ss:$16 sps:$4 sm:$0xff]   ;;  %v17_v46 = vld [vmem:[%s8327_s0] sm:$0xff]  ;;  %v5510_v49 = vld [vmem:[%s8326_s1 + $0x168] ss:$16 sps:$4 sm:$0xff]  }
  0x11   :  { %v21_v47 = vld [vmem:[%s8327_s0 + $0x20] sm:$0xff]  ;;  %v5513_v52 = vld [vmem:[%s8326_s1 + $0x18c] ss:$16 sps:$4 sm:$0xff]   ;;  %v5516_v54 = vld [vmem:[%s8326_s1 + $0x188] ss:$16 sps:$4 sm:$0xff]  }
  0x12   :  { %v5509_v48 = vld [vmem:[%s8326_s1 + $0x160] ss:$16 sps:$4 sm:$0xff]   ;;  %v6394_v50 = vcombine.high %v17_v46, %v21_v47  ;;  %v5511_v51 = vld [vmem:[%s8326_s1 + $0x184] ss:$16 sps:$4 sm:$0xff]   ;;  %v5519_v56 = vld [vmem:[%s8326_s1 + $0x1ac] ss:$16 sps:$4 sm:$0xff]   ;;  %v6452_v5 = vcombine.low %v17_v46, %v21_v47 }
  0x13   :  { %1706 = vmatpush1.bf16.msra.mxu0 %v5467_v18  ;;  %1958 = vmatpush1.bf16.msra.mxu1 %v5468_v19  ;;  %v5515_v53 = vld [vmem:[%s8326_s1 + $0x180] ss:$16 sps:$4 sm:$0xff]   ;;  %v5517_v55 = vld [vmem:[%s8326_s1 + $0x1a4] ss:$16 sps:$4 sm:$0xff]   ;;  %v5522_v58 = vld [vmem:[%s8326_s1 + $0x1a8] ss:$16 sps:$4 sm:$0xff]  }
  0x14   :  { %1707 = vmatprep.subr.bf16.mxu0 %v5469_v20  ;;  %1959 = vmatprep.subr.bf16.mxu1 %v5471_v21  ;;  %v5521_v57 = vld [vmem:[%s8326_s1 + $0x1a0] ss:$16 sps:$4 sm:$0xff]   ;;  %v5523_v59 = vld [vmem:[%s8326_s1 + $0x1c4] ss:$16 sps:$4 sm:$0xff]   ;;  %v5525_v60 = vld [vmem:[%s8326_s1 + $0x1cc] ss:$16 sps:$4 sm:$0xff]  }
  0x15   :  { %1729 = vmatprep.mubr.bf16.mxu0 %v6394_v50  ;;  %1981 = vmatprep.mubr.bf16.mxu1 %v6394_v50  ;;  %v5527_v61 = vld [vmem:[%s8326_s1 + $0x1c0] ss:$16 sps:$4 sm:$0xff]   ;;  %v5528_v62 = vld [vmem:[%s8326_s1 + $0x1c8] ss:$16 sps:$4 sm:$0xff]   ;;  %v5529_v63 = vld [vmem:[%s8326_s1 + $0x1e4] ss:$16 sps:$4 sm:$0xff]  }
  0x16   :  { %v5531_v0 = vld [vmem:[%s8326_s1 + $0x1ec] ss:$16 sps:$4 sm:$0xff]   ;;  %v5533_v1 = vld [vmem:[%s8326_s1 + $0x1e0] ss:$16 sps:$4 sm:$0xff]   ;;  %v5534_v2 = vld [vmem:[%s8326_s1 + $0x1e8] ss:$16 sps:$4 sm:$0xff]  }
  0x17   :  { %1708 = vmatpush1.bf16.msra.mxu0 %v5473_v22  ;;  %1960 = vmatpush1.bf16.msra.mxu1 %v5474_v23  ;;  %v5537_v3 = vld [vmem:[%s8326_s1 + $0x204] ss:$16 sps:$4 sm:$0xff]   ;;  %v5540_v4 = vld [vmem:[%s8326_s1 + $0x20c] ss:$16 sps:$4 sm:$0xff]   ;;  %v5535_v6 = vld [vmem:[%s8326_s1 + $0x200] ss:$16 sps:$4 sm:$0xff]  }
  0x18   :  { %1709 = vmatprep.subr.bf16.mxu0 %v5475_v24  ;;  %1961 = vmatprep.subr.bf16.mxu1 %v5477_v25  ;;  %v5538_v7 = vld [vmem:[%s8326_s1 + $0x208] ss:$16 sps:$4 sm:$0xff]   ;;  %v5543_v8 = vld [vmem:[%s8326_s1 + $0x224] ss:$16 sps:$4 sm:$0xff]   ;;  %v5546_v9 = vld [vmem:[%s8326_s1 + $0x22c] ss:$16 sps:$4 sm:$0xff]  }
  0x19   :  { %v5541_v10 = vld [vmem:[%s8326_s1 + $0x220] ss:$16 sps:$4 sm:$0xff]   ;;  %v5544_v11 = vld [vmem:[%s8326_s1 + $0x228] ss:$16 sps:$4 sm:$0xff]   ;;  %v5549_v12 = vld [vmem:[%s8326_s1 + $0x244] ss:$16 sps:$4 sm:$0xff]  }
  0x1a   :  { %v5552_v13 = vld [vmem:[%s8326_s1 + $0x24c] ss:$16 sps:$4 sm:$0xff]   ;;  %v5547_v14 = vld [vmem:[%s8326_s1 + $0x240] ss:$16 sps:$4 sm:$0xff]   ;;  %v5550_v15 = vld [vmem:[%s8326_s1 + $0x248] ss:$16 sps:$4 sm:$0xff]  }
  0x1b   :  { %1710 = vmatpush1.bf16.msra.mxu0 %v5479_v26  ;;  %1962 = vmatpush1.bf16.msra.mxu1 %v5480_v27  ;;  %v5555_v16 = vld [vmem:[%s8326_s1 + $0x264] ss:$16 sps:$4 sm:$0xff]   ;;  %v5558_v17 = vld [vmem:[%s8326_s1 + $0x26c] ss:$16 sps:$4 sm:$0xff]   ;;  %v5553_v18 = vld [vmem:[%s8326_s1 + $0x260] ss:$16 sps:$4 sm:$0xff]  }
  0x1c   :  { %1711 = vmatprep.subr.bf16.mxu0 %v5481_v28  ;;  %1963 = vmatprep.subr.bf16.mxu1 %v5483_v29  ;;  %v5556_v19 = vld [vmem:[%s8326_s1 + $0x268] ss:$16 sps:$4 sm:$0xff]   ;;  %v25_v20 = vld [vmem:[%s8327_s0 + $0x40] sm:$0xff]  ;;  %v5564_v25 = vld [vmem:[%s8326_s1 + $0x28c] ss:$16 sps:$4 sm:$0xff]  }
  0x1d   :  { %v29_v21 = vld [vmem:[%s8327_s0 + $0x60] sm:$0xff]  ;;  %v5562_v27 = vld [vmem:[%s8326_s1 + $0x288] ss:$16 sps:$4 sm:$0xff]   ;;  %v5570_v29 = vld [vmem:[%s8326_s1 + $0x2ac] ss:$16 sps:$4 sm:$0xff]  }
  0x1e   :  { %v5561_v22 = vld [vmem:[%s8326_s1 + $0x284] ss:$16 sps:$4 sm:$0xff]   ;;  %v6507_v23 = vcombine.high %v25_v20, %v29_v21  ;;  %v6509_v24 = vcombine.low %v25_v20, %v29_v21  ;;  %v5559_v26 = vld [vmem:[%s8326_s1 + $0x280] ss:$16 sps:$4 sm:$0xff]   ;;  %v5580_v46 = vld [vmem:[%s8326_s1 + $0x2e8] ss:$16 sps:$4 sm:$0xff]  }
  0x1f   :  { %1712 = vmatpush1.bf16.msra.mxu0 %v5485_v30  ;;  %1964 = vmatpush1.bf16.msra.mxu1 %v5486_v31  ;;  %v5567_v28 = vld [vmem:[%s8326_s1 + $0x2a4] ss:$16 sps:$4 sm:$0xff]   ;;  %v5634_v20 = vld [vmem:[%s8326_s1 + $0x408] ss:$16 sps:$4 sm:$0xff]  }
  0x20   :  { %1713 = vmatprep.subr.bf16.mxu0 %v5487_v32  ;;  %1965 = vmatprep.subr.bf16.mxu1 %v5489_v33  ;;  %v33_v30 = vld [vmem:[%s8327_s0 + $0x80] sm:$0xff] }
  0x21   :  { %v37_v31 = vld [vmem:[%s8327_s0 + $0xa0] sm:$0xff] }
  0x22   :  { %v6536_v32 = vcombine.high %v33_v30, %v37_v31  ;;  %v6538_v33 = vcombine.low %v33_v30, %v37_v31  ;;  %v5585_v47 = vld [vmem:[%s8326_s1 + $0x304] ss:$16 sps:$4 sm:$0xff]   ;;  %v5640_v30 = vld [vmem:[%s8326_s1 + $0x428] ss:$16 sps:$4 sm:$0xff]  }
  0x23   :  { %1714 = vmatpush1.bf16.msra.mxu0 %v5491_v34  ;;  %1966 = vmatpush1.bf16.msra.mxu1 %v5492_v35  ;;  %v5565_v34 = vld [vmem:[%s8326_s1 + $0x2a0] ss:$16 sps:$4 sm:$0xff]   ;;  %v5568_v35 = vld [vmem:[%s8326_s1 + $0x2a8] ss:$16 sps:$4 sm:$0xff]   ;;  %v5645_v31 = vld [vmem:[%s8326_s1 + $0x444] ss:$16 sps:$4 sm:$0xff]  }
  0x24   :  { %1715 = vmatprep.subr.bf16.mxu0 %v5493_v36  ;;  %1967 = vmatprep.subr.bf16.mxu1 %v5495_v37  ;;  %v5573_v36 = vld [vmem:[%s8326_s1 + $0x2c4] ss:$16 sps:$4 sm:$0xff]   ;;  %v5576_v37 = vld [vmem:[%s8326_s1 + $0x2cc] ss:$16 sps:$4 sm:$0xff]  }
  0x27   :  { %1716 = vmatpush1.bf16.msra.mxu0 %v5497_v38  ;;  %1968 = vmatpush1.bf16.msra.mxu1 %v5498_v39  ;;  %v5571_v38 = vld [vmem:[%s8326_s1 + $0x2c0] ss:$16 sps:$4 sm:$0xff]   ;;  %v5574_v39 = vld [vmem:[%s8326_s1 + $0x2c8] ss:$16 sps:$4 sm:$0xff]  }
  0x28   :  { %1717 = vmatprep.subr.bf16.mxu0 %v5499_v40  ;;  %1969 = vmatprep.subr.bf16.mxu1 %v5501_v41  ;;  %v6565_v40 = vld [vmem:[%s8327_s0 + $0x8] sm:$0xff] }
  0x29   :  { %v6570_v41 = vld [vmem:[%s8327_s0 + $0x28] sm:$0xff] }
  0x2a   :  { %v6700_v21 = vcombine.low %v6565_v40, %v6570_v41 }
  0x2b   :  { %1718 = vmatpush1.bf16.msra.mxu0 %v5503_v42  ;;  %1970 = vmatpush1.bf16.msra.mxu1 %v5504_v43  ;;  %v5579_v42 = vld [vmem:[%s8326_s1 + $0x2e4] ss:$16 sps:$4 sm:$0xff]   ;;  %v6577_v43 = vcombine.high %v6565_v40, %v6570_v41  ;;  %v5654_v41 = vld [vmem:[%s8326_s1 + $0x46c] ss:$16 sps:$4 sm:$0xff]  }
  0x2c   :  { %1719 = vmatprep.subr.bf16.mxu0 %v5505_v44  ;;  %1971 = vmatprep.subr.bf16.mxu1 %v5507_v45  ;;  %v5582_v44 = vld [vmem:[%s8326_s1 + $0x2ec] ss:$16 sps:$4 sm:$0xff]   ;;  %v5577_v45 = vld [vmem:[%s8326_s1 + $0x2e0] ss:$16 sps:$4 sm:$0xff]   ;;  %v5651_v40 = vld [vmem:[%s8326_s1 + $0x464] ss:$16 sps:$4 sm:$0xff]  }
  0x2f   :  { %1720 = vmatpush1.bf16.msra.mxu0 %v5509_v48  ;;  %1972 = vmatpush1.bf16.msra.mxu1 %v5510_v49  ;;  %v5588_v48 = vld [vmem:[%s8326_s1 + $0x30c] ss:$16 sps:$4 sm:$0xff]   ;;  %v5583_v49 = vld [vmem:[%s8326_s1 + $0x300] ss:$16 sps:$4 sm:$0xff]  }
  0x30   :  { %1721 = vmatprep.subr.bf16.mxu0 %v5511_v51  ;;  %1973 = vmatprep.subr.bf16.mxu1 %v5513_v52  ;;  %v5586_v51 = vld [vmem:[%s8326_s1 + $0x308] ss:$16 sps:$4 sm:$0xff]   ;;  %v5591_v52 = vld [vmem:[%s8326_s1 + $0x324] ss:$16 sps:$4 sm:$0xff]  }
  0x33   :  { %1722 = vmatpush1.bf16.msra.mxu0 %v5515_v53  ;;  %1974 = vmatpush1.bf16.msra.mxu1 %v5516_v54  ;;  %v5594_v53 = vld [vmem:[%s8326_s1 + $0x32c] ss:$16 sps:$4 sm:$0xff]   ;;  %v5589_v54 = vld [vmem:[%s8326_s1 + $0x320] ss:$16 sps:$4 sm:$0xff]  }
  0x34   :  { %1723 = vmatprep.subr.bf16.mxu0 %v5517_v55  ;;  %1975 = vmatprep.subr.bf16.mxu1 %v5519_v56  ;;  %v5592_v55 = vld [vmem:[%s8326_s1 + $0x328] ss:$16 sps:$4 sm:$0xff]   ;;  %v5597_v56 = vld [vmem:[%s8326_s1 + $0x344] ss:$16 sps:$4 sm:$0xff]  }
  0x37   :  { %1724 = vmatpush1.bf16.msra.mxu0 %v5521_v57  ;;  %1976 = vmatpush1.bf16.msra.mxu1 %v5522_v58  ;;  %v5600_v57 = vld [vmem:[%s8326_s1 + $0x34c] ss:$16 sps:$4 sm:$0xff]   ;;  %v5595_v58 = vld [vmem:[%s8326_s1 + $0x340] ss:$16 sps:$4 sm:$0xff]  }
  0x38   :  { %1725 = vmatprep.subr.bf16.mxu0 %v5523_v59  ;;  %1977 = vmatprep.subr.bf16.mxu1 %v5525_v60  ;;  %v5598_v59 = vld [vmem:[%s8326_s1 + $0x348] ss:$16 sps:$4 sm:$0xff]   ;;  %v5603_v60 = vld [vmem:[%s8326_s1 + $0x364] ss:$16 sps:$4 sm:$0xff]  }
  0x3b   :  { %1726 = vmatpush1.bf16.msra.mxu0 %v5527_v61  ;;  %1978 = vmatpush1.bf16.msra.mxu1 %v5528_v62  ;;  %v5606_v61 = vld [vmem:[%s8326_s1 + $0x36c] ss:$16 sps:$4 sm:$0xff]   ;;  %v5601_v62 = vld [vmem:[%s8326_s1 + $0x360] ss:$16 sps:$4 sm:$0xff]  }
  0x3c   :  { %1727 = vmatprep.subr.bf16.mxu0 %v5529_v63  ;;  %1979 = vmatprep.subr.bf16.mxu1 %v5531_v0  ;;  %v5604_v63 = vld [vmem:[%s8326_s1 + $0x368] ss:$16 sps:$4 sm:$0xff]   ;;  %v5609_v0 = vld [vmem:[%s8326_s1 + $0x384] ss:$16 sps:$4 sm:$0xff]  }
  0x3f   :  { %1728 = vmatpush1.bf16.msra.mxu0 %v5533_v1  ;;  %1980 = vmatpush1.bf16.msra.mxu1 %v5534_v2  ;;  %v5612_v1 = vld [vmem:[%s8326_s1 + $0x38c] ss:$16 sps:$4 sm:$0xff]   ;;  %v5607_v2 = vld [vmem:[%s8326_s1 + $0x380] ss:$16 sps:$4 sm:$0xff]  }
  0x40   :  { %1760 = vmatprep.subr.bf16.mxu0 %v5537_v3  ;;  %2012 = vmatprep.subr.bf16.mxu1 %v5540_v4  ;;  %v5610_v3 = vld [vmem:[%s8326_s1 + $0x388] ss:$16 sps:$4 sm:$0xff]   ;;  %v5615_v4 = vld [vmem:[%s8326_s1 + $0x3a4] ss:$16 sps:$4 sm:$0xff]  }
  0x42   :  { %1730 = vmatmul.mubr.bf16.vlgmr.msra.gmra.mrb[0].mxu0 %v6452_v5  ;;  %1982 = vmatmul.mubr.bf16.vlgmr.msra.gmra.mrb[0].mxu1 %v6452_v5 }
  0x43   :  { %1761 = vmatpush1.bf16.msra.mxu0 %v5535_v6  ;;  %2013 = vmatpush1.bf16.msra.mxu1 %v5538_v7  ;;  %v5618_v6 = vld [vmem:[%s8326_s1 + $0x3ac] ss:$16 sps:$4 sm:$0xff]   ;;  %v5613_v7 = vld [vmem:[%s8326_s1 + $0x3a0] ss:$16 sps:$4 sm:$0xff]  }
  0x44   :  { %1762 = vmatprep.subr.bf16.mxu0 %v5543_v8  ;;  %2014 = vmatprep.subr.bf16.mxu1 %v5546_v9  ;;  %v5616_v8 = vld [vmem:[%s8326_s1 + $0x3a8] ss:$16 sps:$4 sm:$0xff]   ;;  %v5621_v9 = vld [vmem:[%s8326_s1 + $0x3c4] ss:$16 sps:$4 sm:$0xff]  }
  0x45   :  { %1739 = vmatprep.mubr.bf16.mxu0 %v6507_v23  ;;  %1991 = vmatprep.mubr.bf16.mxu1 %v6507_v23 }
  0x47   :  { %1763 = vmatpush1.bf16.msra.mxu0 %v5541_v10  ;;  %2015 = vmatpush1.bf16.msra.mxu1 %v5544_v11  ;;  %v5624_v10 = vld [vmem:[%s8326_s1 + $0x3cc] ss:$16 sps:$4 sm:$0xff]   ;;  %v5619_v11 = vld [vmem:[%s8326_s1 + $0x3c0] ss:$16 sps:$4 sm:$0xff]  }
  0x48   :  { %1764 = vmatprep.subr.bf16.mxu0 %v5549_v12  ;;  %2016 = vmatprep.subr.bf16.mxu1 %v5552_v13  ;;  %v5622_v12 = vld [vmem:[%s8326_s1 + $0x3c8] ss:$16 sps:$4 sm:$0xff]   ;;  %v5627_v13 = vld [vmem:[%s8326_s1 + $0x3e4] ss:$16 sps:$4 sm:$0xff]  }
  0x4a   :  { %1740 = vmatmul.mubr.bf16.gmra.mrb[4].mxu0 %v6509_v24  ;;  %1992 = vmatmul.mubr.bf16.gmra.mrb[4].mxu1 %v6509_v24 }
  0x4b   :  { %1765 = vmatpush1.bf16.msra.mxu0 %v5547_v14  ;;  %2017 = vmatpush1.bf16.msra.mxu1 %v5550_v15  ;;  %v5630_v14 = vld [vmem:[%s8326_s1 + $0x3ec] ss:$16 sps:$4 sm:$0xff]   ;;  %v5625_v15 = vld [vmem:[%s8326_s1 + $0x3e0] ss:$16 sps:$4 sm:$0xff]  }
  0x4c   :  { %1766 = vmatprep.subr.bf16.mxu0 %v5555_v16  ;;  %2018 = vmatprep.subr.bf16.mxu1 %v5558_v17  ;;  %v5628_v16 = vld [vmem:[%s8326_s1 + $0x3e8] ss:$16 sps:$4 sm:$0xff]   ;;  %v5633_v17 = vld [vmem:[%s8326_s1 + $0x404] ss:$16 sps:$4 sm:$0xff]  }
  0x4d   :  { %1749 = vmatprep.mubr.bf16.mxu0 %v6536_v32  ;;  %2001 = vmatprep.mubr.bf16.mxu1 %v6536_v32 }
  0x4f   :  { %1767 = vmatpush1.bf16.msra.mxu0 %v5553_v18  ;;  %2019 = vmatpush1.bf16.msra.mxu1 %v5556_v19  ;;  %v5636_v18 = vld [vmem:[%s8326_s1 + $0x40c] ss:$16 sps:$4 sm:$0xff]   ;;  %v5631_v19 = vld [vmem:[%s8326_s1 + $0x400] ss:$16 sps:$4 sm:$0xff]  }
  0x50   :  { %1768 = vmatprep.subr.bf16.mxu0 %v5561_v22  ;;  %2020 = vmatprep.subr.bf16.mxu1 %v5564_v25  ;;  %v26_v22 = vld [vmem:[%s8327_s0 + $0x48] sm:$0xff] }
  0x51   :  { %v30_v25 = vld [vmem:[%s8327_s0 + $0x68] sm:$0xff] }
  0x52   :  { %1750 = vmatmul.mubr.bf16.gmra.mrb[8].mxu0 %v6538_v33  ;;  %2002 = vmatmul.mubr.bf16.gmra.mrb[8].mxu1 %v6538_v33 }
  0x53   :  { %1769 = vmatpush1.bf16.msra.mxu0 %v5559_v26  ;;  %2021 = vmatpush1.bf16.msra.mxu1 %v5562_v27  ;;  %v5639_v26 = vld [vmem:[%s8326_s1 + $0x424] ss:$16 sps:$4 sm:$0xff]   ;;  %v5642_v27 = vld [vmem:[%s8326_s1 + $0x42c] ss:$16 sps:$4 sm:$0xff]  }
  0x54   :  { %1770 = vmatprep.subr.bf16.mxu0 %v5567_v28  ;;  %2022 = vmatprep.subr.bf16.mxu1 %v5570_v29  ;;  %v6714_v28 = vcombine.high %v26_v22, %v30_v25  ;;  %v5637_v29 = vld [vmem:[%s8326_s1 + $0x420] ss:$16 sps:$4 sm:$0xff]  }
  0x55   :  { %1792 = vmatprep.mubr.bf16.mxu0 %v6577_v43  ;;  %2044 = vmatprep.mubr.bf16.mxu1 %v6577_v43 }
  0x57   :  { %1771 = vmatpush1.bf16.msra.mxu0 %v5565_v34  ;;  %2023 = vmatpush1.bf16.msra.mxu1 %v5568_v35  ;;  %v5648_v34 = vld [vmem:[%s8326_s1 + $0x44c] ss:$16 sps:$4 sm:$0xff]  }
  0x58   :  { %1772 = vmatprep.subr.bf16.mxu0 %v5573_v36  ;;  %2024 = vmatprep.subr.bf16.mxu1 %v5576_v37  ;;  %v34_v35 = vld [vmem:[%s8327_s0 + $0x88] sm:$0xff]  ;;  %v6735_v36 = vcombine.low %v26_v22, %v30_v25  ;;  %v5703_v25 = vld [vmem:[%s8326_s1 + $0x580] ss:$16 sps:$4 sm:$0xff]  }
  0x59   :  { %v38_v37 = vld [vmem:[%s8327_s0 + $0xa8] sm:$0xff] }
  0x5a   :  { %v5708_v22 = vld [vmem:[%s8326_s1 + $0x58c] ss:$16 sps:$4 sm:$0xff]  }
  0x5b   :  { %1773 = vmatpush1.bf16.msra.mxu0 %v5571_v38  ;;  %2025 = vmatpush1.bf16.msra.mxu1 %v5574_v39  ;;  %v5643_v38 = vld [vmem:[%s8326_s1 + $0x440] ss:$16 sps:$4 sm:$0xff]   ;;  %v5646_v39 = vld [vmem:[%s8326_s1 + $0x448] ss:$16 sps:$4 sm:$0xff]  }
  0x5c   :  { %1774 = vmatprep.subr.bf16.mxu0 %v5579_v42  ;;  %2026 = vmatprep.subr.bf16.mxu1 %v5582_v44  ;;  %v6752_v42 = vcombine.high %v34_v35, %v38_v37  ;;  %v5649_v44 = vld [vmem:[%s8326_s1 + $0x460] ss:$16 sps:$4 sm:$0xff]  }
  0x5f   :  { %1775 = vmatpush1.bf16.msra.mxu0 %v5577_v45  ;;  %2027 = vmatpush1.bf16.msra.mxu1 %v5580_v46  ;;  %v5652_v45 = vld [vmem:[%s8326_s1 + $0x468] ss:$16 sps:$4 sm:$0xff]   ;;  %v5657_v46 = vld [vmem:[%s8326_s1 + $0x484] ss:$16 sps:$4 sm:$0xff]  }
  0x60   :  { %1776 = vmatprep.subr.bf16.mxu0 %v5585_v47  ;;  %2028 = vmatprep.subr.bf16.mxu1 %v5588_v48  ;;  %v5660_v47 = vld [vmem:[%s8326_s1 + $0x48c] ss:$16 sps:$4 sm:$0xff]   ;;  %v6773_v48 = vld [vmem:[%s8327_s0 + $0x10] sm:$0xff] }
  0x63   :  { %1777 = vmatpush1.bf16.msra.mxu0 %v5583_v49  ;;  %2029 = vmatpush1.bf16.msra.mxu1 %v5586_v51  ;;  %v6775_v49 = vcombine.low %v34_v35, %v38_v37  ;;  %v6780_v51 = vld [vmem:[%s8327_s0 + $0x30] sm:$0xff]  ;;  %v5720_v35 = vld [vmem:[%s8326_s1 + $0x5cc] ss:$16 sps:$4 sm:$0xff]  }
  0x64   :  { %1778 = vmatprep.subr.bf16.mxu0 %v5591_v52  ;;  %2030 = vmatprep.subr.bf16.mxu1 %v5594_v53  ;;  %v5655_v52 = vld [vmem:[%s8326_s1 + $0x480] ss:$16 sps:$4 sm:$0xff]   ;;  %v5658_v53 = vld [vmem:[%s8326_s1 + $0x488] ss:$16 sps:$4 sm:$0xff]  }
  0x65   :  { %v5715_v37 = vld [vmem:[%s8326_s1 + $0x5c0] ss:$16 sps:$4 sm:$0xff]  }
  0x67   :  { %1779 = vmatpush1.bf16.msra.mxu0 %v5589_v54  ;;  %2031 = vmatpush1.bf16.msra.mxu1 %v5592_v55  ;;  %v5663_v54 = vld [vmem:[%s8326_s1 + $0x4a4] ss:$16 sps:$4 sm:$0xff]   ;;  %v5666_v55 = vld [vmem:[%s8326_s1 + $0x4ac] ss:$16 sps:$4 sm:$0xff]  }
  0x68   :  { %1780 = vmatprep.subr.bf16.mxu0 %v5597_v56  ;;  %2032 = vmatprep.subr.bf16.mxu1 %v5600_v57  ;;  %v6796_v56 = vcombine.high %v6773_v48, %v6780_v51  ;;  %v5661_v57 = vld [vmem:[%s8326_s1 + $0x4a0] ss:$16 sps:$4 sm:$0xff]  }
  0x6b   :  { %1781 = vmatpush1.bf16.msra.mxu0 %v5595_v58  ;;  %2033 = vmatpush1.bf16.msra.mxu1 %v5598_v59  ;;  %v5664_v58 = vld [vmem:[%s8326_s1 + $0x4a8] ss:$16 sps:$4 sm:$0xff]   ;;  %v5669_v59 = vld [vmem:[%s8326_s1 + $0x4c4] ss:$16 sps:$4 sm:$0xff]  }
  0x6c   :  { %1782 = vmatprep.subr.bf16.mxu0 %v5603_v60  ;;  %2034 = vmatprep.subr.bf16.mxu1 %v5606_v61  ;;  %v5672_v60 = vld [vmem:[%s8326_s1 + $0x4cc] ss:$16 sps:$4 sm:$0xff]   ;;  %v5667_v61 = vld [vmem:[%s8326_s1 + $0x4c0] ss:$16 sps:$4 sm:$0xff]  }
  0x6f   :  { %1783 = vmatpush1.bf16.msra.mxu0 %v5601_v62  ;;  %2035 = vmatpush1.bf16.msra.mxu1 %v5604_v63  ;;  %v5670_v62 = vld [vmem:[%s8326_s1 + $0x4c8] ss:$16 sps:$4 sm:$0xff]   ;;  %v5675_v63 = vld [vmem:[%s8326_s1 + $0x4e4] ss:$16 sps:$4 sm:$0xff]  }
  0x70   :  { %1784 = vmatprep.subr.bf16.mxu0 %v5609_v0  ;;  %2036 = vmatprep.subr.bf16.mxu1 %v5612_v1  ;;  %v5678_v0 = vld [vmem:[%s8326_s1 + $0x4ec] ss:$16 sps:$4 sm:$0xff]   ;;  %v5673_v1 = vld [vmem:[%s8326_s1 + $0x4e0] ss:$16 sps:$4 sm:$0xff]  }
  0x73   :  { %1785 = vmatpush1.bf16.msra.mxu0 %v5607_v2  ;;  %2037 = vmatpush1.bf16.msra.mxu1 %v5610_v3  ;;  %v5676_v2 = vld [vmem:[%s8326_s1 + $0x4e8] ss:$16 sps:$4 sm:$0xff]   ;;  %v5681_v3 = vld [vmem:[%s8326_s1 + $0x504] ss:$16 sps:$4 sm:$0xff]  }
  0x74   :  { %1786 = vmatprep.subr.bf16.mxu0 %v5615_v4  ;;  %2038 = vmatprep.subr.bf16.mxu1 %v5618_v6  ;;  %v5684_v4 = vld [vmem:[%s8326_s1 + $0x50c] ss:$16 sps:$4 sm:$0xff]   ;;  %v5679_v6 = vld [vmem:[%s8326_s1 + $0x500] ss:$16 sps:$4 sm:$0xff]  }
  0x77   :  { %1787 = vmatpush1.bf16.msra.mxu0 %v5613_v7  ;;  %2039 = vmatpush1.bf16.msra.mxu1 %v5616_v8  ;;  %v5682_v7 = vld [vmem:[%s8326_s1 + $0x508] ss:$16 sps:$4 sm:$0xff]   ;;  %v5687_v8 = vld [vmem:[%s8326_s1 + $0x524] ss:$16 sps:$4 sm:$0xff]  }
  0x78   :  { %1788 = vmatprep.subr.bf16.mxu0 %v5621_v9  ;;  %2040 = vmatprep.subr.bf16.mxu1 %v5624_v10  ;;  %v5690_v9 = vld [vmem:[%s8326_s1 + $0x52c] ss:$16 sps:$4 sm:$0xff]   ;;  %v5685_v10 = vld [vmem:[%s8326_s1 + $0x520] ss:$16 sps:$4 sm:$0xff]  }
  0x7b   :  { %1789 = vmatpush1.bf16.msra.mxu0 %v5619_v11  ;;  %2041 = vmatpush1.bf16.msra.mxu1 %v5622_v12  ;;  %v5688_v11 = vld [vmem:[%s8326_s1 + $0x528] ss:$16 sps:$4 sm:$0xff]   ;;  %v5693_v12 = vld [vmem:[%s8326_s1 + $0x544] ss:$16 sps:$4 sm:$0xff]  }
  0x7c   :  { %1790 = vmatprep.subr.bf16.mxu0 %v5627_v13  ;;  %2042 = vmatprep.subr.bf16.mxu1 %v5630_v14  ;;  %v5696_v13 = vld [vmem:[%s8326_s1 + $0x54c] ss:$16 sps:$4 sm:$0xff]   ;;  %v5691_v14 = vld [vmem:[%s8326_s1 + $0x540] ss:$16 sps:$4 sm:$0xff]  }
  0x7f   :  { %1791 = vmatpush1.bf16.msra.mxu0 %v5625_v15  ;;  %2043 = vmatpush1.bf16.msra.mxu1 %v5628_v16  ;;  %v5694_v15 = vld [vmem:[%s8326_s1 + $0x548] ss:$16 sps:$4 sm:$0xff]   ;;  %v5699_v16 = vld [vmem:[%s8326_s1 + $0x564] ss:$16 sps:$4 sm:$0xff]  }
  0x80   :  { %1823 = vmatprep.subr.bf16.mxu0 %v5633_v17  ;;  %2075 = vmatprep.subr.bf16.mxu1 %v5636_v18  ;;  %v5702_v17 = vld [vmem:[%s8326_s1 + $0x56c] ss:$16 sps:$4 sm:$0xff]   ;;  %v5697_v18 = vld [vmem:[%s8326_s1 + $0x560] ss:$16 sps:$4 sm:$0xff]  }
  0x82   :  { %1793 = vmatmul.mubr.bf16.vlgmr.msra.gmra.mrb[0].mxu0 %v6700_v21  ;;  %2045 = vmatmul.mubr.bf16.vlgmr.msra.gmra.mrb[0].mxu1 %v6700_v21 }
  0x83   :  { %1824 = vmatpush1.bf16.msra.mxu0 %v5631_v19  ;;  %2076 = vmatpush1.bf16.msra.mxu1 %v5634_v20  ;;  %v5700_v19 = vld [vmem:[%s8326_s1 + $0x568] ss:$16 sps:$4 sm:$0xff]   ;;  %v5705_v20 = vld [vmem:[%s8326_s1 + $0x584] ss:$16 sps:$4 sm:$0xff]  }
  0x84   :  { %1825 = vmatprep.subr.bf16.mxu0 %v5639_v26  ;;  %2077 = vmatprep.subr.bf16.mxu1 %v5642_v27  ;;  %v5706_v26 = vld [vmem:[%s8326_s1 + $0x588] ss:$16 sps:$4 sm:$0xff]   ;;  %v5711_v27 = vld [vmem:[%s8326_s1 + $0x5a4] ss:$16 sps:$4 sm:$0xff]  }
  0x85   :  { %1802 = vmatprep.mubr.bf16.mxu0 %v6714_v28  ;;  %2054 = vmatprep.mubr.bf16.mxu1 %v6714_v28 }
  0x87   :  { %1826 = vmatpush1.bf16.msra.mxu0 %v5637_v29  ;;  %2078 = vmatpush1.bf16.msra.mxu1 %v5640_v30  ;;  %v5714_v29 = vld [vmem:[%s8326_s1 + $0x5ac] ss:$16 sps:$4 sm:$0xff]   ;;  %v5709_v30 = vld [vmem:[%s8326_s1 + $0x5a0] ss:$16 sps:$4 sm:$0xff]  }
  0x88   :  { %1827 = vmatprep.subr.bf16.mxu0 %v5645_v31  ;;  %2079 = vmatprep.subr.bf16.mxu1 %v5648_v34  ;;  %v5712_v31 = vld [vmem:[%s8326_s1 + $0x5a8] ss:$16 sps:$4 sm:$0xff]   ;;  %v5717_v34 = vld [vmem:[%s8326_s1 + $0x5c4] ss:$16 sps:$4 sm:$0xff]  }
  0x8a   :  { %1803 = vmatmul.mubr.bf16.gmra.mrb[4].mxu0 %v6735_v36  ;;  %2055 = vmatmul.mubr.bf16.gmra.mrb[4].mxu1 %v6735_v36 }
  0x8b   :  { %1828 = vmatpush1.bf16.msra.mxu0 %v5643_v38  ;;  %2080 = vmatpush1.bf16.msra.mxu1 %v5646_v39  ;;  %v5718_v38 = vld [vmem:[%s8326_s1 + $0x5c8] ss:$16 sps:$4 sm:$0xff]   ;;  %v5723_v39 = vld [vmem:[%s8326_s1 + $0x5e4] ss:$16 sps:$4 sm:$0xff]  }
  0x8c   :  { %1829 = vmatprep.subr.bf16.mxu0 %v5651_v40  ;;  %2081 = vmatprep.subr.bf16.mxu1 %v5654_v41  ;;  %v5726_v40 = vld [vmem:[%s8326_s1 + $0x5ec] ss:$16 sps:$4 sm:$0xff]   ;;  %v5721_v41 = vld [vmem:[%s8326_s1 + $0x5e0] ss:$16 sps:$4 sm:$0xff]  }
  0x8d   :  { %1812 = vmatprep.mubr.bf16.mxu0 %v6752_v42  ;;  %2064 = vmatprep.mubr.bf16.mxu1 %v6752_v42 }
  0x8f   :  { %1830 = vmatpush1.bf16.msra.mxu0 %v5649_v44  ;;  %2082 = vmatpush1.bf16.msra.mxu1 %v5652_v45  ;;  %v5724_v44 = vld [vmem:[%s8326_s1 + $0x5e8] ss:$16 sps:$4 sm:$0xff]   ;;  %v5729_v45 = vld [vmem:[%s8326_s1 + $0x604] ss:$16 sps:$4 sm:$0xff]  }
  0x90   :  { %1831 = vmatprep.subr.bf16.mxu0 %v5657_v46  ;;  %2083 = vmatprep.subr.bf16.mxu1 %v5660_v47  ;;  %v5732_v46 = vld [vmem:[%s8326_s1 + $0x60c] ss:$16 sps:$4 sm:$0xff]   ;;  %v5727_v47 = vld [vmem:[%s8326_s1 + $0x600] ss:$16 sps:$4 sm:$0xff]  }
  0x92   :  { %1813 = vmatmul.mubr.bf16.gmra.mrb[8].mxu0 %v6775_v49  ;;  %2065 = vmatmul.mubr.bf16.gmra.mrb[8].mxu1 %v6775_v49 }
  0x93   :  { %1832 = vmatpush1.bf16.msra.mxu0 %v5655_v52  ;;  %2084 = vmatpush1.bf16.msra.mxu1 %v5658_v53  ;;  %v5730_v52 = vld [vmem:[%s8326_s1 + $0x608] ss:$16 sps:$4 sm:$0xff]   ;;  %v6942_v53 = vcombine.low %v6773_v48, %v6780_v51  ;;  %v5738_v48 = vld [vmem:[%s8326_s1 + $0x62c] ss:$16 sps:$4 sm:$0xff]  }
  0x94   :  { %1833 = vmatprep.subr.bf16.mxu0 %v5663_v54  ;;  %2085 = vmatprep.subr.bf16.mxu1 %v5666_v55  ;;  %v27_v54 = vld [vmem:[%s8327_s0 + $0x50] sm:$0xff] }
  0x95   :  { %1855 = vmatprep.mubr.bf16.mxu0 %v6796_v56  ;;  %2107 = vmatprep.mubr.bf16.mxu1 %v6796_v56  ;;  %v31_v55 = vld [vmem:[%s8327_s0 + $0x70] sm:$0xff] }
  0x96   :  { %v6956_v51 = vcombine.high %v27_v54, %v31_v55 }
  0x97   :  { %1834 = vmatpush1.bf16.msra.mxu0 %v5661_v57  ;;  %2086 = vmatpush1.bf16.msra.mxu1 %v5664_v58  ;;  %v5735_v57 = vld [vmem:[%s8326_s1 + $0x624] ss:$16 sps:$4 sm:$0xff]   ;;  %v5733_v58 = vld [vmem:[%s8326_s1 + $0x620] ss:$16 sps:$4 sm:$0xff]  }
  0x98   :  { %1835 = vmatprep.subr.bf16.mxu0 %v5669_v59  ;;  %2087 = vmatprep.subr.bf16.mxu1 %v5672_v60  ;;  %v5736_v59 = vld [vmem:[%s8326_s1 + $0x628] ss:$16 sps:$4 sm:$0xff]   ;;  %v5741_v60 = vld [vmem:[%s8326_s1 + $0x644] ss:$16 sps:$4 sm:$0xff]  }
  0x9b   :  { %1836 = vmatpush1.bf16.msra.mxu0 %v5667_v61  ;;  %2088 = vmatpush1.bf16.msra.mxu1 %v5670_v62  ;;  %v5744_v61 = vld [vmem:[%s8326_s1 + $0x64c] ss:$16 sps:$4 sm:$0xff]   ;;  %v5739_v62 = vld [vmem:[%s8326_s1 + $0x640] ss:$16 sps:$4 sm:$0xff]  }
  0x9c   :  { %1837 = vmatprep.subr.bf16.mxu0 %v5675_v63  ;;  %2089 = vmatprep.subr.bf16.mxu1 %v5678_v0  ;;  %v5742_v63 = vld [vmem:[%s8326_s1 + $0x648] ss:$16 sps:$4 sm:$0xff]   ;;  %v6980_v0 = vcombine.low %v27_v54, %v31_v55  ;;  %v5795_v55 = vld [vmem:[%s8326_s1 + $0x764] ss:$16 sps:$4 sm:$0xff]  }
  0x9d   :  { %v5790_v54 = vld [vmem:[%s8326_s1 + $0x748] ss:$16 sps:$4 sm:$0xff]  }
  0x9f   :  { %1838 = vmatpush1.bf16.msra.mxu0 %v5673_v1  ;;  %2090 = vmatpush1.bf16.msra.mxu1 %v5676_v2  ;;  %v35_v1 = vld [vmem:[%s8327_s0 + $0x90] sm:$0xff] }
  0xa0   :  { %1839 = vmatprep.subr.bf16.mxu0 %v5681_v3  ;;  %2091 = vmatprep.subr.bf16.mxu1 %v5684_v4  ;;  %v39_v2 = vld [vmem:[%s8327_s0 + $0xb0] sm:$0xff]  ;;  %v5750_v4 = vld [vmem:[%s8326_s1 + $0x66c] ss:$16 sps:$4 sm:$0xff]  }
  0xa1   :  { %v5747_v3 = vld [vmem:[%s8326_s1 + $0x664] ss:$16 sps:$4 sm:$0xff]  }
  0xa3   :  { %1840 = vmatpush1.bf16.msra.mxu0 %v5679_v6  ;;  %2092 = vmatpush1.bf16.msra.mxu1 %v5682_v7  ;;  %v6994_v6 = vcombine.high %v35_v1, %v39_v2  ;;  %v5745_v7 = vld [vmem:[%s8326_s1 + $0x660] ss:$16 sps:$4 sm:$0xff]  }
  0xa4   :  { %1841 = vmatprep.subr.bf16.mxu0 %v5687_v8  ;;  %2093 = vmatprep.subr.bf16.mxu1 %v5690_v9  ;;  %v5748_v8 = vld [vmem:[%s8326_s1 + $0x668] ss:$16 sps:$4 sm:$0xff]   ;;  %v5753_v9 = vld [vmem:[%s8326_s1 + $0x684] ss:$16 sps:$4 sm:$0xff]  }
  0xa7   :  { %1842 = vmatpush1.bf16.msra.mxu0 %v5685_v10  ;;  %2094 = vmatpush1.bf16.msra.mxu1 %v5688_v11  ;;  %v5756_v10 = vld [vmem:[%s8326_s1 + $0x68c] ss:$16 sps:$4 sm:$0xff]   ;;  %v5751_v11 = vld [vmem:[%s8326_s1 + $0x680] ss:$16 sps:$4 sm:$0xff]  }
  0xa8   :  { %1843 = vmatprep.subr.bf16.mxu0 %v5693_v12  ;;  %2095 = vmatprep.subr.bf16.mxu1 %v5696_v13  ;;  %v5754_v12 = vld [vmem:[%s8326_s1 + $0x688] ss:$16 sps:$4 sm:$0xff]   ;;  %v7018_v13 = vcombine.low %v35_v1, %v39_v2  ;;  %v5810_v1 = vld [vmem:[%s8326_s1 + $0x7ac] ss:$16 sps:$4 sm:$0xff]   ;;  %v5805_v2 = vld [vmem:[%s8326_s1 + $0x7a0] ss:$16 sps:$4 sm:$0xff]  }
  0xab   :  { %1844 = vmatpush1.bf16.msra.mxu0 %v5691_v14  ;;  %2096 = vmatpush1.bf16.msra.mxu1 %v5694_v15  ;;  %v7023_v14 = vld [vmem:[%s8327_s0 + $0x18] sm:$0xff] }
  0xac   :  { %1845 = vmatprep.subr.bf16.mxu0 %v5699_v16  ;;  %2097 = vmatprep.subr.bf16.mxu1 %v5702_v17  ;;  %v7028_v15 = vld [vmem:[%s8327_s0 + $0x38] sm:$0xff]  ;;  %v5759_v16 = vld [vmem:[%s8326_s1 + $0x6a4] ss:$16 sps:$4 sm:$0xff]  }
  0xad   :  { %v5762_v17 = vld [vmem:[%s8326_s1 + $0x6ac] ss:$16 sps:$4 sm:$0xff]  }
  0xaf   :  { %1846 = vmatpush1.bf16.msra.mxu0 %v5697_v18  ;;  %2098 = vmatpush1.bf16.msra.mxu1 %v5700_v19  ;;  %v7038_v18 = vcombine.high %v7023_v14, %v7028_v15  ;;  %v5757_v19 = vld [vmem:[%s8326_s1 + $0x6a0] ss:$16 sps:$4 sm:$0xff]  }
  0xb0   :  { %1847 = vmatprep.subr.bf16.mxu0 %v5705_v20  ;;  %2099 = vmatprep.subr.bf16.mxu1 %v5708_v22  ;;  %v5760_v20 = vld [vmem:[%s8326_s1 + $0x6a8] ss:$16 sps:$4 sm:$0xff]   ;;  %v5765_v22 = vld [vmem:[%s8326_s1 + $0x6c4] ss:$16 sps:$4 sm:$0xff]  }
  0xb3   :  { %1848 = vmatpush1.bf16.msra.mxu0 %v5703_v25  ;;  %2100 = vmatpush1.bf16.msra.mxu1 %v5706_v26  ;;  %v5768_v25 = vld [vmem:[%s8326_s1 + $0x6cc] ss:$16 sps:$4 sm:$0xff]   ;;  %v5763_v26 = vld [vmem:[%s8326_s1 + $0x6c0] ss:$16 sps:$4 sm:$0xff]  }
  0xb4   :  { %1849 = vmatprep.subr.bf16.mxu0 %v5711_v27  ;;  %2101 = vmatprep.subr.bf16.mxu1 %v5714_v29  ;;  %v5766_v27 = vld [vmem:[%s8326_s1 + $0x6c8] ss:$16 sps:$4 sm:$0xff]   ;;  %v5771_v29 = vld [vmem:[%s8326_s1 + $0x6e4] ss:$16 sps:$4 sm:$0xff]  }
  0xb7   :  { %1850 = vmatpush1.bf16.msra.mxu0 %v5709_v30  ;;  %2102 = vmatpush1.bf16.msra.mxu1 %v5712_v31  ;;  %v5774_v30 = vld [vmem:[%s8326_s1 + $0x6ec] ss:$16 sps:$4 sm:$0xff]   ;;  %v5769_v31 = vld [vmem:[%s8326_s1 + $0x6e0] ss:$16 sps:$4 sm:$0xff]  }
  0xb8   :  { %1851 = vmatprep.subr.bf16.mxu0 %v5717_v34  ;;  %2103 = vmatprep.subr.bf16.mxu1 %v5720_v35  ;;  %v5772_v34 = vld [vmem:[%s8326_s1 + $0x6e8] ss:$16 sps:$4 sm:$0xff]   ;;  %v5777_v35 = vld [vmem:[%s8326_s1 + $0x704] ss:$16 sps:$4 sm:$0xff]  }
  0xbb   :  { %1852 = vmatpush1.bf16.msra.mxu0 %v5715_v37  ;;  %2104 = vmatpush1.bf16.msra.mxu1 %v5718_v38  ;;  %v5780_v37 = vld [vmem:[%s8326_s1 + $0x70c] ss:$16 sps:$4 sm:$0xff]   ;;  %v5775_v38 = vld [vmem:[%s8326_s1 + $0x700] ss:$16 sps:$4 sm:$0xff]  }
  0xbc   :  { %1853 = vmatprep.subr.bf16.mxu0 %v5723_v39  ;;  %2105 = vmatprep.subr.bf16.mxu1 %v5726_v40  ;;  %v5778_v39 = vld [vmem:[%s8326_s1 + $0x708] ss:$16 sps:$4 sm:$0xff]   ;;  %v5783_v40 = vld [vmem:[%s8326_s1 + $0x724] ss:$16 sps:$4 sm:$0xff]  }
  0xbf   :  { %1854 = vmatpush1.bf16.msra.mxu0 %v5721_v41  ;;  %2106 = vmatpush1.bf16.msra.mxu1 %v5724_v44  ;;  %v5786_v41 = vld [vmem:[%s8326_s1 + $0x72c] ss:$16 sps:$4 sm:$0xff]   ;;  %v5781_v44 = vld [vmem:[%s8326_s1 + $0x720] ss:$16 sps:$4 sm:$0xff]  }
  0xc0   :  { %1886 = vmatprep.subr.bf16.mxu0 %v5729_v45  ;;  %2138 = vmatprep.subr.bf16.mxu1 %v5732_v46  ;;  %v5784_v45 = vld [vmem:[%s8326_s1 + $0x728] ss:$16 sps:$4 sm:$0xff]   ;;  %v5789_v46 = vld [vmem:[%s8326_s1 + $0x744] ss:$16 sps:$4 sm:$0xff]  }
  0xc2   :  { %1856 = vmatmul.mubr.bf16.vlgmr.msra.gmra.mrb[0].mxu0 %v6942_v53  ;;  %2108 = vmatmul.mubr.bf16.vlgmr.msra.gmra.mrb[0].mxu1 %v6942_v53 }
  0xc3   :  { %1887 = vmatpush1.bf16.msra.mxu0 %v5727_v47  ;;  %2139 = vmatpush1.bf16.msra.mxu1 %v5730_v52  ;;  %v5792_v47 = vld [vmem:[%s8326_s1 + $0x74c] ss:$16 sps:$4 sm:$0xff]   ;;  %v5787_v52 = vld [vmem:[%s8326_s1 + $0x740] ss:$16 sps:$4 sm:$0xff]  }
  0xc4   :  { %1888 = vmatprep.subr.bf16.mxu0 %v5735_v57  ;;  %2140 = vmatprep.subr.bf16.mxu1 %v5738_v48  ;;  %v5798_v57 = vld [vmem:[%s8326_s1 + $0x76c] ss:$16 sps:$4 sm:$0xff]   ;;  %v5793_v48 = vld [vmem:[%s8326_s1 + $0x760] ss:$16 sps:$4 sm:$0xff]  }
  0xc5   :  { %1865 = vmatprep.mubr.bf16.mxu0 %v6956_v51  ;;  %2117 = vmatprep.mubr.bf16.mxu1 %v6956_v51 }
  0xc7   :  { %1889 = vmatpush1.bf16.msra.mxu0 %v5733_v58  ;;  %2141 = vmatpush1.bf16.msra.mxu1 %v5736_v59  ;;  %v5796_v58 = vld [vmem:[%s8326_s1 + $0x768] ss:$16 sps:$4 sm:$0xff]   ;;  %v5801_v59 = vld [vmem:[%s8326_s1 + $0x784] ss:$16 sps:$4 sm:$0xff]  }
  0xc8   :  { %1890 = vmatprep.subr.bf16.mxu0 %v5741_v60  ;;  %2142 = vmatprep.subr.bf16.mxu1 %v5744_v61  ;;  %v5804_v60 = vld [vmem:[%s8326_s1 + $0x78c] ss:$16 sps:$4 sm:$0xff]   ;;  %v5799_v61 = vld [vmem:[%s8326_s1 + $0x780] ss:$16 sps:$4 sm:$0xff]  }
  0xca   :  { %1866 = vmatmul.mubr.bf16.gmra.mrb[4].mxu0 %v6980_v0  ;;  %2118 = vmatmul.mubr.bf16.gmra.mrb[4].mxu1 %v6980_v0 }
  0xcb   :  { %1891 = vmatpush1.bf16.msra.mxu0 %v5739_v62  ;;  %2143 = vmatpush1.bf16.msra.mxu1 %v5742_v63  ;;  %v5802_v62 = vld [vmem:[%s8326_s1 + $0x788] ss:$16 sps:$4 sm:$0xff]   ;;  %v5807_v63 = vld [vmem:[%s8326_s1 + $0x7a4] ss:$16 sps:$4 sm:$0xff]  }
  0xcc   :  { %1892 = vmatprep.subr.bf16.mxu0 %v5747_v3  ;;  %2144 = vmatprep.subr.bf16.mxu1 %v5750_v4  ;;  %v5808_v3 = vld [vmem:[%s8326_s1 + $0x7a8] ss:$16 sps:$4 sm:$0xff]   ;;  %v5813_v4 = vld [vmem:[%s8326_s1 + $0x7c4] ss:$16 sps:$4 sm:$0xff]  }
  0xcd   :  { %1875 = vmatprep.mubr.bf16.mxu0 %v6994_v6  ;;  %2127 = vmatprep.mubr.bf16.mxu1 %v6994_v6 }
  0xcf   :  { %1893 = vmatpush1.bf16.msra.mxu0 %v5745_v7  ;;  %2145 = vmatpush1.bf16.msra.mxu1 %v5748_v8  ;;  %v5816_v7 = vld [vmem:[%s8326_s1 + $0x7cc] ss:$16 sps:$4 sm:$0xff]   ;;  %v5811_v8 = vld [vmem:[%s8326_s1 + $0x7c0] ss:$16 sps:$4 sm:$0xff]  }
  0xd0   :  { %1894 = vmatprep.subr.bf16.mxu0 %v5753_v9  ;;  %2146 = vmatprep.subr.bf16.mxu1 %v5756_v10  ;;  %v5814_v9 = vld [vmem:[%s8326_s1 + $0x7c8] ss:$16 sps:$4 sm:$0xff]   ;;  %v5819_v10 = vld [vmem:[%s8326_s1 + $0x7e4] ss:$16 sps:$4 sm:$0xff]  }
  0xd2   :  { %1876 = vmatmul.mubr.bf16.gmra.mrb[8].mxu0 %v7018_v13  ;;  %2128 = vmatmul.mubr.bf16.gmra.mrb[8].mxu1 %v7018_v13 }
  0xd3   :  { %1895 = vmatpush1.bf16.msra.mxu0 %v5751_v11  ;;  %2147 = vmatpush1.bf16.msra.mxu1 %v5754_v12  ;;  %v5822_v11 = vld [vmem:[%s8326_s1 + $0x7ec] ss:$16 sps:$4 sm:$0xff]   ;;  %v5817_v12 = vld [vmem:[%s8326_s1 + $0x7e0] ss:$16 sps:$4 sm:$0xff]  }
  0xd4   :  { %1896 = vmatprep.subr.bf16.mxu0 %v5759_v16  ;;  %2148 = vmatprep.subr.bf16.mxu1 %v5762_v17  ;;  %v5820_v16 = vld [vmem:[%s8326_s1 + $0x7e8] ss:$16 sps:$4 sm:$0xff]   ;;  %v5825_v17 = vld [vmem:[%s8328_s2 + $0x4] ss:$16 sps:$4 sm:$0xff]  }
  0xd5   :  { %1918 = vmatprep.mubr.bf16.mxu0 %v7038_v18  ;;  %2170 = vmatprep.mubr.bf16.mxu1 %v7038_v18 }
  0xd7   :  { %1897 = vmatpush1.bf16.msra.mxu0 %v5757_v19  ;;  %2149 = vmatpush1.bf16.msra.mxu1 %v5760_v20  ;;  %v5828_v19 = vld [vmem:[%s8328_s2 + $0xc] ss:$16 sps:$4 sm:$0xff]   ;;  %v5823_v20 = vld [vmem:[%s8328_s2] ss:$16 sps:$4 sm:$0xff]  }
  0xd8   :  { %1898 = vmatprep.subr.bf16.mxu0 %v5765_v22  ;;  %2150 = vmatprep.subr.bf16.mxu1 %v5768_v25  ;;  %v5826_v22 = vld [vmem:[%s8328_s2 + $0x8] ss:$16 sps:$4 sm:$0xff]   ;;  %v7184_v25 = vcombine.low %v7023_v14, %v7028_v15  ;;  %v5834_v14 = vld [vmem:[%s8328_s2 + $0x2c] ss:$16 sps:$4 sm:$0xff]  }
  0xdb   :  { %1899 = vmatpush1.bf16.msra.mxu0 %v5763_v26  ;;  %2151 = vmatpush1.bf16.msra.mxu1 %v5766_v27  ;;  %v28_v26 = vld [vmem:[%s8327_s0 + $0x58] sm:$0xff] }
  0xdc   :  { %1900 = vmatprep.subr.bf16.mxu0 %v5771_v29  ;;  %2152 = vmatprep.subr.bf16.mxu1 %v5774_v30  ;;  %v32_v27 = vld [vmem:[%s8327_s0 + $0x78] sm:$0xff]  ;;  %v5831_v29 = vld [vmem:[%s8328_s2 + $0x24] ss:$16 sps:$4 sm:$0xff]   ;;  %v5829_v30 = vld [vmem:[%s8328_s2 + $0x20] ss:$16 sps:$4 sm:$0xff]  }
  0xdd   :  { %v7198_v15 = vcombine.high %v28_v26, %v32_v27 }
  0xdf   :  { %1901 = vmatpush1.bf16.msra.mxu0 %v5769_v31  ;;  %2153 = vmatpush1.bf16.msra.mxu1 %v5772_v34  ;;  %v5832_v31 = vld [vmem:[%s8328_s2 + $0x28] ss:$16 sps:$4 sm:$0xff]   ;;  %v5837_v34 = vld [vmem:[%s8328_s2 + $0x44] ss:$16 sps:$4 sm:$0xff]  }
  0xe0   :  { %1902 = vmatprep.subr.bf16.mxu0 %v5777_v35  ;;  %2154 = vmatprep.subr.bf16.mxu1 %v5780_v37  ;;  %v5840_v35 = vld [vmem:[%s8328_s2 + $0x4c] ss:$16 sps:$4 sm:$0xff]   ;;  %v5835_v37 = vld [vmem:[%s8328_s2 + $0x40] ss:$16 sps:$4 sm:$0xff]  }
  0xe3   :  { %1903 = vmatpush1.bf16.msra.mxu0 %v5775_v38  ;;  %2155 = vmatpush1.bf16.msra.mxu1 %v5778_v39  ;;  %v5838_v38 = vld [vmem:[%s8328_s2 + $0x48] ss:$16 sps:$4 sm:$0xff]   ;;  %v7222_v39 = vcombine.low %v28_v26, %v32_v27  ;;  %v5888_v26 = vld [vmem:[%s8328_s2 + $0x14c] ss:$16 sps:$4 sm:$0xff]   ;;  %v5883_v27 = vld [vmem:[%s8328_s2 + $0x140] ss:$16 sps:$4 sm:$0xff]  }
  0xe4   :  { %1904 = vmatprep.subr.bf16.mxu0 %v5783_v40  ;;  %2156 = vmatprep.subr.bf16.mxu1 %v5786_v41  ;;  %v36_v40 = vld [vmem:[%s8327_s0 + $0x98] sm:$0xff] }
  0xe5   :  { %v40_v41 = vld [vmem:[%s8327_s0 + $0xb8] sm:$0xff] }
  0xe7   :  { %1905 = vmatpush1.bf16.msra.mxu0 %v5781_v44  ;;  %2157 = vmatpush1.bf16.msra.mxu1 %v5784_v45  ;;  %v5843_v44 = vld [vmem:[%s8328_s2 + $0x64] ss:$16 sps:$4 sm:$0xff]   ;;  %v5846_v45 = vld [vmem:[%s8328_s2 + $0x6c] ss:$16 sps:$4 sm:$0xff]  }
  0xe8   :  { %1906 = vmatprep.subr.bf16.mxu0 %v5789_v46  ;;  %2158 = vmatprep.subr.bf16.mxu1 %v5792_v47  ;;  %v7236_v46 = vcombine.high %v36_v40, %v40_v41  ;;  %v5841_v47 = vld [vmem:[%s8328_s2 + $0x60] ss:$16 sps:$4 sm:$0xff]  }
  0xeb   :  { %1907 = vmatpush1.bf16.msra.mxu0 %v5787_v52  ;;  %2159 = vmatpush1.bf16.msra.mxu1 %v5790_v54  ;;  %v5844_v52 = vld [vmem:[%s8328_s2 + $0x68] ss:$16 sps:$4 sm:$0xff]   ;;  %v5849_v54 = vld [vmem:[%s8328_s2 + $0x84] ss:$16 sps:$4 sm:$0xff]  }
  0xec   :  { %1908 = vmatprep.subr.bf16.mxu0 %v5795_v55  ;;  %2160 = vmatprep.subr.bf16.mxu1 %v5798_v57  ;;  %v5852_v55 = vld [vmem:[%s8328_s2 + $0x8c] ss:$16 sps:$4 sm:$0xff]   ;;  %v7254_v57 = vcombine.low %v36_v40, %v40_v41  ;;  %v5898_v40 = vld [vmem:[%s8328_s2 + $0x188] ss:$16 sps:$4 sm:$0xff]   ;;  %v5903_v41 = vld [vmem:[%s8328_s2 + $0x1a4] ss:$16 sps:$4 sm:$0xff]  }
  0xef   :  { %1909 = vmatpush1.bf16.msra.mxu0 %v5793_v48  ;;  %2161 = vmatpush1.bf16.msra.mxu1 %v5796_v58  ;;  %v5847_v48 = vld [vmem:[%s8328_s2 + $0x80] ss:$16 sps:$4 sm:$0xff]   ;;  %v5850_v58 = vld [vmem:[%s8328_s2 + $0x88] ss:$16 sps:$4 sm:$0xff]  }
  0xf0   :  { %1910 = vmatprep.subr.bf16.mxu0 %v5801_v59  ;;  %2162 = vmatprep.subr.bf16.mxu1 %v5804_v60  ;;  %v5855_v59 = vld [vmem:[%s8328_s2 + $0xa4] ss:$16 sps:$4 sm:$0xff]   ;;  %v5858_v60 = vld [vmem:[%s8328_s2 + $0xac] ss:$16 sps:$4 sm:$0xff]  }
  0xf3   :  { %1911 = vmatpush1.bf16.msra.mxu0 %v5799_v61  ;;  %2163 = vmatpush1.bf16.msra.mxu1 %v5802_v62  ;;  %v5853_v61 = vld [vmem:[%s8328_s2 + $0xa0] ss:$16 sps:$4 sm:$0xff]   ;;  %v5856_v62 = vld [vmem:[%s8328_s2 + $0xa8] ss:$16 sps:$4 sm:$0xff]  }
  0xf4   :  { %1912 = vmatprep.subr.bf16.mxu0 %v5807_v63  ;;  %2164 = vmatprep.subr.bf16.mxu1 %v5810_v1  ;;  %v5861_v63 = vld [vmem:[%s8328_s2 + $0xc4] ss:$16 sps:$4 sm:$0xff]   ;;  %v5864_v1 = vld [vmem:[%s8328_s2 + $0xcc] ss:$16 sps:$4 sm:$0xff]  }
  0xf7   :  { %1913 = vmatpush1.bf16.msra.mxu0 %v5805_v2  ;;  %2165 = vmatpush1.bf16.msra.mxu1 %v5808_v3  ;;  %v5859_v2 = vld [vmem:[%s8328_s2 + $0xc0] ss:$16 sps:$4 sm:$0xff]   ;;  %v5862_v3 = vld [vmem:[%s8328_s2 + $0xc8] ss:$16 sps:$4 sm:$0xff]  }
  0xf8   :  { %1914 = vmatprep.subr.bf16.mxu0 %v5813_v4  ;;  %2166 = vmatprep.subr.bf16.mxu1 %v5816_v7  ;;  %v5867_v4 = vld [vmem:[%s8328_s2 + $0xe4] ss:$16 sps:$4 sm:$0xff]   ;;  %v5865_v7 = vld [vmem:[%s8328_s2 + $0xe0] ss:$16 sps:$4 sm:$0xff]  }
  0xfb   :  { %1915 = vmatpush1.bf16.msra.mxu0 %v5811_v8  ;;  %2167 = vmatpush1.bf16.msra.mxu1 %v5814_v9  ;;  %v5868_v8 = vld [vmem:[%s8328_s2 + $0xe8] ss:$16 sps:$4 sm:$0xff]   ;;  %v5873_v9 = vld [vmem:[%s8328_s2 + $0x104] ss:$16 sps:$4 sm:$0xff]  }
  0xfc   :  { %1916 = vmatprep.subr.bf16.mxu0 %v5819_v10  ;;  %2168 = vmatprep.subr.bf16.mxu1 %v5822_v11  ;;  %v5876_v10 = vld [vmem:[%s8328_s2 + $0x10c] ss:$16 sps:$4 sm:$0xff]   ;;  %v5871_v11 = vld [vmem:[%s8328_s2 + $0x100] ss:$16 sps:$4 sm:$0xff]  }
  0xff   :  { %1917 = vmatpush1.bf16.msra.mxu0 %v5817_v12  ;;  %2169 = vmatpush1.bf16.msra.mxu1 %v5820_v16  ;;  %v5874_v12 = vld [vmem:[%s8328_s2 + $0x108] ss:$16 sps:$4 sm:$0xff]   ;;  %v5879_v16 = vld [vmem:[%s8328_s2 + $0x124] ss:$16 sps:$4 sm:$0xff]  }
 0x100   :  { %3737 = vmatprep.subr.bf16.mxu0 %v5825_v17  ;;  %3989 = vmatprep.subr.bf16.mxu1 %v5828_v19  ;;  %v5882_v17 = vld [vmem:[%s8328_s2 + $0x12c] ss:$16 sps:$4 sm:$0xff]   ;;  %v5877_v19 = vld [vmem:[%s8328_s2 + $0x120] ss:$16 sps:$4 sm:$0xff]  }
 0x102   :  { %1919 = vmatmul.mubr.bf16.vlgmr.msra.gmra.mrb[0].mxu0 %v7184_v25  ;;  %2171 = vmatmul.mubr.bf16.vlgmr.msra.gmra.mrb[0].mxu1 %v7184_v25 }
 0x103   :  { %3738 = vmatpush1.bf16.msra.mxu0 %v5823_v20  ;;  %3990 = vmatpush1.bf16.msra.mxu1 %v5826_v22  ;;  %v5880_v20 = vld [vmem:[%s8328_s2 + $0x128] ss:$16 sps:$4 sm:$0xff]   ;;  %v5885_v22 = vld [vmem:[%s8328_s2 + $0x144] ss:$16 sps:$4 sm:$0xff]  }
 0x104   :  { %3739 = vmatprep.subr.bf16.mxu0 %v5831_v29  ;;  %3991 = vmatprep.subr.bf16.mxu1 %v5834_v14  ;;  %v5886_v29 = vld [vmem:[%s8328_s2 + $0x148] ss:$16 sps:$4 sm:$0xff]   ;;  %v5891_v14 = vld [vmem:[%s8328_s2 + $0x164] ss:$16 sps:$4 sm:$0xff]  }
 0x105   :  { %1928 = vmatprep.mubr.bf16.mxu0 %v7198_v15  ;;  %2180 = vmatprep.mubr.bf16.mxu1 %v7198_v15 }
 0x107   :  { %3740 = vmatpush1.bf16.msra.mxu0 %v5829_v30  ;;  %3992 = vmatpush1.bf16.msra.mxu1 %v5832_v31  ;;  %v5894_v30 = vld [vmem:[%s8328_s2 + $0x16c] ss:$16 sps:$4 sm:$0xff]   ;;  %v5889_v31 = vld [vmem:[%s8328_s2 + $0x160] ss:$16 sps:$4 sm:$0xff]  }
 0x108   :  { %3741 = vmatprep.subr.bf16.mxu0 %v5837_v34  ;;  %3993 = vmatprep.subr.bf16.mxu1 %v5840_v35  ;;  %v5892_v34 = vld [vmem:[%s8328_s2 + $0x168] ss:$16 sps:$4 sm:$0xff]   ;;  %v5897_v35 = vld [vmem:[%s8328_s2 + $0x184] ss:$16 sps:$4 sm:$0xff]  }
 0x10a   :  { %1929 = vmatmul.mubr.bf16.gmra.mrb[4].mxu0 %v7222_v39  ;;  %2181 = vmatmul.mubr.bf16.gmra.mrb[4].mxu1 %v7222_v39 }
 0x10b   :  { %3742 = vmatpush1.bf16.msra.mxu0 %v5835_v37  ;;  %3994 = vmatpush1.bf16.msra.mxu1 %v5838_v38  ;;  %v5900_v37 = vld [vmem:[%s8328_s2 + $0x18c] ss:$16 sps:$4 sm:$0xff]   ;;  %v5895_v38 = vld [vmem:[%s8328_s2 + $0x180] ss:$16 sps:$4 sm:$0xff]  }
 0x10c   :  { %3743 = vmatprep.subr.bf16.mxu0 %v5843_v44  ;;  %3995 = vmatprep.subr.bf16.mxu1 %v5846_v45  ;;  %v5906_v44 = vld [vmem:[%s8328_s2 + $0x1ac] ss:$16 sps:$4 sm:$0xff]   ;;  %v5901_v45 = vld [vmem:[%s8328_s2 + $0x1a0] ss:$16 sps:$4 sm:$0xff]  }
 0x10d   :  { %1938 = vmatprep.mubr.bf16.mxu0 %v7236_v46  ;;  %2190 = vmatprep.mubr.bf16.mxu1 %v7236_v46 }
 0x10f   :  { %3744 = vmatpush1.bf16.msra.mxu0 %v5841_v47  ;;  %3996 = vmatpush1.bf16.msra.mxu1 %v5844_v52  ;;  %v5904_v47 = vld [vmem:[%s8328_s2 + $0x1a8] ss:$16 sps:$4 sm:$0xff]   ;;  %v5909_v52 = vld [vmem:[%s8328_s2 + $0x1c4] ss:$16 sps:$4 sm:$0xff]  }
 0x110   :  { %3745 = vmatprep.subr.bf16.mxu0 %v5849_v54  ;;  %3997 = vmatprep.subr.bf16.mxu1 %v5852_v55  ;;  %v5912_v54 = vld [vmem:[%s8328_s2 + $0x1cc] ss:$16 sps:$4 sm:$0xff]   ;;  %v5907_v55 = vld [vmem:[%s8328_s2 + $0x1c0] ss:$16 sps:$4 sm:$0xff]  }
 0x112   :  { %1939 = vmatmul.mubr.bf16.gmra.mrb[8].mxu0 %v7254_v57  ;;  %2191 = vmatmul.mubr.bf16.gmra.mrb[8].mxu1 %v7254_v57 }
 0x113   :  { %3746 = vmatpush1.bf16.msra.mxu0 %v5847_v48  ;;  %3998 = vmatpush1.bf16.msra.mxu1 %v5850_v58  ;;  %v5910_v48 = vld [vmem:[%s8328_s2 + $0x1c8] ss:$16 sps:$4 sm:$0xff]   ;;  %v5915_v58 = vld [vmem:[%s8328_s2 + $0x1e4] ss:$16 sps:$4 sm:$0xff]  }
 0x114   :  { %3747 = vmatprep.subr.bf16.mxu0 %v5855_v59  ;;  %3999 = vmatprep.subr.bf16.mxu1 %v5858_v60  ;;  %v5918_v59 = vld [vmem:[%s8328_s2 + $0x1ec] ss:$16 sps:$4 sm:$0xff]   ;;  %v5913_v60 = vld [vmem:[%s8328_s2 + $0x1e0] ss:$16 sps:$4 sm:$0xff]  }
 0x115   :  { %3769 = vmatprep.mubr.bf16.mxu0 %v6394_v50  ;;  %4021 = vmatprep.mubr.bf16.mxu1 %v6394_v50  ;;  %v5870_v50 = vld [vmem:[%s8328_s2 + $0xec] ss:$16 sps:$4 sm:$0xff]  }
 0x117   :  { %3748 = vmatpush1.bf16.msra.mxu0 %v5853_v61  ;;  %4000 = vmatpush1.bf16.msra.mxu1 %v5856_v62  ;;  %v5916_v61 = vld [vmem:[%s8328_s2 + $0x1e8] ss:$16 sps:$4 sm:$0xff]   ;;  %v5921_v62 = vld [vmem:[%s8328_s2 + $0x204] ss:$16 sps:$4 sm:$0xff]  }
 0x118   :  { %3749 = vmatprep.subr.bf16.mxu0 %v5861_v63  ;;  %4001 = vmatprep.subr.bf16.mxu1 %v5864_v1  ;;  %v5924_v63 = vld [vmem:[%s8328_s2 + $0x20c] ss:$16 sps:$4 sm:$0xff]   ;;  %v5919_v1 = vld [vmem:[%s8328_s2 + $0x200] ss:$16 sps:$4 sm:$0xff]  }
 0x11b   :  { %3750 = vmatpush1.bf16.msra.mxu0 %v5859_v2  ;;  %4002 = vmatpush1.bf16.msra.mxu1 %v5862_v3  ;;  %v5922_v2 = vld [vmem:[%s8328_s2 + $0x208] ss:$16 sps:$4 sm:$0xff]   ;;  %v5927_v3 = vld [vmem:[%s8328_s2 + $0x224] ss:$16 sps:$4 sm:$0xff]  }
 0x11c   :  { %3751 = vmatprep.subr.bf16.mxu0 %v5867_v4  ;;  %4003 = vmatprep.subr.bf16.mxu1 %v5870_v50  ;;  %v5930_v4 = vld [vmem:[%s8328_s2 + $0x22c] ss:$16 sps:$4 sm:$0xff]   ;;  %v5925_v50 = vld [vmem:[%s8328_s2 + $0x220] ss:$16 sps:$4 sm:$0xff]  }
 0x11f   :  { %3752 = vmatpush1.bf16.msra.mxu0 %v5865_v7  ;;  %4004 = vmatpush1.bf16.msra.mxu1 %v5868_v8  ;;  %v5928_v7 = vld [vmem:[%s8328_s2 + $0x228] ss:$16 sps:$4 sm:$0xff]   ;;  %v5933_v8 = vld [vmem:[%s8328_s2 + $0x244] ss:$16 sps:$4 sm:$0xff]  }
 0x120   :  { %3753 = vmatprep.subr.bf16.mxu0 %v5873_v9  ;;  %4005 = vmatprep.subr.bf16.mxu1 %v5876_v10  ;;  %v5931_v9 = vld [vmem:[%s8328_s2 + $0x240] ss:$16 sps:$4 sm:$0xff]   ;;  %v5934_v10 = vld [vmem:[%s8328_s2 + $0x248] ss:$16 sps:$4 sm:$0xff]  }
 0x123   :  { %3754 = vmatpush1.bf16.msra.mxu0 %v5871_v11  ;;  %4006 = vmatpush1.bf16.msra.mxu1 %v5874_v12  ;;  %v5939_v11 = vld [vmem:[%s8328_s2 + $0x264] ss:$16 sps:$4 sm:$0xff]   ;;  %v5937_v12 = vld [vmem:[%s8328_s2 + $0x260] ss:$16 sps:$4 sm:$0xff]  }
 0x124   :  { %3755 = vmatprep.subr.bf16.mxu0 %v5879_v16  ;;  %4007 = vmatprep.subr.bf16.mxu1 %v5882_v17  ;;  %v5940_v16 = vld [vmem:[%s8328_s2 + $0x268] ss:$16 sps:$4 sm:$0xff]   ;;  %v5945_v17 = vld [vmem:[%s8328_s2 + $0x284] ss:$16 sps:$4 sm:$0xff]  }
 0x127   :  { %3756 = vmatpush1.bf16.msra.mxu0 %v5877_v19  ;;  %4008 = vmatpush1.bf16.msra.mxu1 %v5880_v20  ;;  %v5943_v19 = vld [vmem:[%s8328_s2 + $0x280] ss:$16 sps:$4 sm:$0xff]   ;;  %v5946_v20 = vld [vmem:[%s8328_s2 + $0x288] ss:$16 sps:$4 sm:$0xff]  }
 0x128   :  { %3757 = vmatprep.subr.bf16.mxu0 %v5885_v22  ;;  %4009 = vmatprep.subr.bf16.mxu1 %v5888_v26  ;;  %v5951_v22 = vld [vmem:[%s8328_s2 + $0x2a4] ss:$16 sps:$4 sm:$0xff]   ;;  %v5949_v26 = vld [vmem:[%s8328_s2 + $0x2a0] ss:$16 sps:$4 sm:$0xff]  }
 0x12b   :  { %3758 = vmatpush1.bf16.msra.mxu0 %v5883_v27  ;;  %4010 = vmatpush1.bf16.msra.mxu1 %v5886_v29  ;;  %v5952_v27 = vld [vmem:[%s8328_s2 + $0x2a8] ss:$16 sps:$4 sm:$0xff]   ;;  %v5957_v29 = vld [vmem:[%s8328_s2 + $0x2c4] ss:$16 sps:$4 sm:$0xff]  }
 0x12c   :  { %3759 = vmatprep.subr.bf16.mxu0 %v5891_v14  ;;  %4011 = vmatprep.subr.bf16.mxu1 %v5894_v30  ;;  %v5955_v14 = vld [vmem:[%s8328_s2 + $0x2c0] ss:$16 sps:$4 sm:$0xff]   ;;  %v5958_v30 = vld [vmem:[%s8328_s2 + $0x2c8] ss:$16 sps:$4 sm:$0xff]  }
 0x12f   :  { %3760 = vmatpush1.bf16.msra.mxu0 %v5889_v31  ;;  %4012 = vmatpush1.bf16.msra.mxu1 %v5892_v34  ;;  %v5963_v31 = vld [vmem:[%s8328_s2 + $0x2e4] ss:$16 sps:$4 sm:$0xff]   ;;  %v5961_v34 = vld [vmem:[%s8328_s2 + $0x2e0] ss:$16 sps:$4 sm:$0xff]  }
 0x130   :  { %3761 = vmatprep.subr.bf16.mxu0 %v5897_v35  ;;  %4013 = vmatprep.subr.bf16.mxu1 %v5900_v37  ;;  %v5964_v35 = vld [vmem:[%s8328_s2 + $0x2e8] ss:$16 sps:$4 sm:$0xff]   ;;  %v5969_v37 = vld [vmem:[%s8328_s2 + $0x304] ss:$16 sps:$4 sm:$0xff]  }
 0x133   :  { %3762 = vmatpush1.bf16.msra.mxu0 %v5895_v38  ;;  %4014 = vmatpush1.bf16.msra.mxu1 %v5898_v40  ;;  %v5972_v38 = vld [vmem:[%s8328_s2 + $0x30c] ss:$16 sps:$4 sm:$0xff]   ;;  %v5967_v40 = vld [vmem:[%s8328_s2 + $0x300] ss:$16 sps:$4 sm:$0xff]  }
 0x134   :  { %3763 = vmatprep.subr.bf16.mxu0 %v5903_v41  ;;  %4015 = vmatprep.subr.bf16.mxu1 %v5906_v44  ;;  %v5970_v41 = vld [vmem:[%s8328_s2 + $0x308] ss:$16 sps:$4 sm:$0xff]   ;;  %v5975_v44 = vld [vmem:[%s8328_s2 + $0x324] ss:$16 sps:$4 sm:$0xff]  }
 0x137   :  { %3764 = vmatpush1.bf16.msra.mxu0 %v5901_v45  ;;  %4016 = vmatpush1.bf16.msra.mxu1 %v5904_v47  ;;  %v5978_v45 = vld [vmem:[%s8328_s2 + $0x32c] ss:$16 sps:$4 sm:$0xff]   ;;  %v5973_v47 = vld [vmem:[%s8328_s2 + $0x320] ss:$16 sps:$4 sm:$0xff]  }
 0x138   :  { %3765 = vmatprep.subr.bf16.mxu0 %v5909_v52  ;;  %4017 = vmatprep.subr.bf16.mxu1 %v5912_v54  ;;  %v5976_v52 = vld [vmem:[%s8328_s2 + $0x328] ss:$16 sps:$4 sm:$0xff]   ;;  %v5981_v54 = vld [vmem:[%s8328_s2 + $0x344] ss:$16 sps:$4 sm:$0xff]  }
 0x13b   :  { %3766 = vmatpush1.bf16.msra.mxu0 %v5907_v55  ;;  %4018 = vmatpush1.bf16.msra.mxu1 %v5910_v48  ;;  %v5984_v55 = vld [vmem:[%s8328_s2 + $0x34c] ss:$16 sps:$4 sm:$0xff]   ;;  %v5979_v48 = vld [vmem:[%s8328_s2 + $0x340] ss:$16 sps:$4 sm:$0xff]  }
 0x13c   :  { %3767 = vmatprep.subr.bf16.mxu0 %v5915_v58  ;;  %4019 = vmatprep.subr.bf16.mxu1 %v5918_v59  ;;  %v5982_v58 = vld [vmem:[%s8328_s2 + $0x348] ss:$16 sps:$4 sm:$0xff]   ;;  %v5987_v59 = vld [vmem:[%s8328_s2 + $0x364] ss:$16 sps:$4 sm:$0xff]  }
 0x13f   :  { %3768 = vmatpush1.bf16.msra.mxu0 %v5913_v60  ;;  %4020 = vmatpush1.bf16.msra.mxu1 %v5916_v61  ;;  %v5990_v60 = vld [vmem:[%s8328_s2 + $0x36c] ss:$16 sps:$4 sm:$0xff]   ;;  %v5985_v61 = vld [vmem:[%s8328_s2 + $0x360] ss:$16 sps:$4 sm:$0xff]  }
 0x140   :  { %3800 = vmatprep.subr.bf16.mxu0 %v5921_v62  ;;  %4052 = vmatprep.subr.bf16.mxu1 %v5924_v63  ;;  %v5988_v62 = vld [vmem:[%s8328_s2 + $0x368] ss:$16 sps:$4 sm:$0xff]   ;;  %v5993_v63 = vld [vmem:[%s8328_s2 + $0x384] ss:$16 sps:$4 sm:$0xff]  }
 0x142   :  { %3770 = vmatmul.mubr.bf16.vlgmr.msra.gmra.mrb[12].mxu0 %v6452_v5  ;;  %4022 = vmatmul.mubr.bf16.vlgmr.msra.gmra.mrb[12].mxu1 %v6452_v5  ;;  %v5936_v5 = vld [vmem:[%s8328_s2 + $0x24c] ss:$16 sps:$4 sm:$0xff]  }
 0x143   :  { %3801 = vmatpush1.bf16.msra.mxu0 %v5919_v1  ;;  %4053 = vmatpush1.bf16.msra.mxu1 %v5922_v2  ;;  %v5996_v1 = vld [vmem:[%s8328_s2 + $0x38c] ss:$16 sps:$4 sm:$0xff]   ;;  %v5991_v2 = vld [vmem:[%s8328_s2 + $0x380] ss:$16 sps:$4 sm:$0xff]  }
 0x144   :  { %3802 = vmatprep.subr.bf16.mxu0 %v5927_v3  ;;  %4054 = vmatprep.subr.bf16.mxu1 %v5930_v4  ;;  %v5994_v3 = vld [vmem:[%s8328_s2 + $0x388] ss:$16 sps:$4 sm:$0xff]   ;;  %v5999_v4 = vld [vmem:[%s8328_s2 + $0x3a4] ss:$16 sps:$4 sm:$0xff]  }
 0x145   :  { %3779 = vmatprep.mubr.bf16.mxu0 %v6507_v23  ;;  %4031 = vmatprep.mubr.bf16.mxu1 %v6507_v23  ;;  %v5942_v23 = vld [vmem:[%s8328_s2 + $0x26c] ss:$16 sps:$4 sm:$0xff]  }
 0x147   :  { %3803 = vmatpush1.bf16.msra.mxu0 %v5925_v50  ;;  %4055 = vmatpush1.bf16.msra.mxu1 %v5928_v7  ;;  %v6002_v50 = vld [vmem:[%s8328_s2 + $0x3ac] ss:$16 sps:$4 sm:$0xff]   ;;  %v5997_v7 = vld [vmem:[%s8328_s2 + $0x3a0] ss:$16 sps:$4 sm:$0xff]  }
 0x148   :  { %3804 = vmatprep.subr.bf16.mxu0 %v5933_v8  ;;  %4056 = vmatprep.subr.bf16.mxu1 %v5936_v5  ;;  %v6000_v8 = vld [vmem:[%s8328_s2 + $0x3a8] ss:$16 sps:$4 sm:$0xff]   ;;  %v6005_v5 = vld [vmem:[%s8328_s2 + $0x3c4] ss:$16 sps:$4 sm:$0xff]  }
 0x14a   :  { %3780 = vmatmul.mubr.bf16.gmra.mrb[16].mxu0 %v6509_v24  ;;  %4032 = vmatmul.mubr.bf16.gmra.mrb[16].mxu1 %v6509_v24  ;;  %v5948_v24 = vld [vmem:[%s8328_s2 + $0x28c] ss:$16 sps:$4 sm:$0xff]  }
 0x14b   :  { %3805 = vmatpush1.bf16.msra.mxu0 %v5931_v9  ;;  %4057 = vmatpush1.bf16.msra.mxu1 %v5934_v10  ;;  %v6008_v9 = vld [vmem:[%s8328_s2 + $0x3cc] ss:$16 sps:$4 sm:$0xff]   ;;  %v6003_v10 = vld [vmem:[%s8328_s2 + $0x3c0] ss:$16 sps:$4 sm:$0xff]  }
 0x14c   :  { %3806 = vmatprep.subr.bf16.mxu0 %v5939_v11  ;;  %4058 = vmatprep.subr.bf16.mxu1 %v5942_v23  ;;  %v6006_v11 = vld [vmem:[%s8328_s2 + $0x3c8] ss:$16 sps:$4 sm:$0xff]   ;;  %v6011_v23 = vld [vmem:[%s8328_s2 + $0x3e4] ss:$16 sps:$4 sm:$0xff]  }
 0x14d   :  { %3789 = vmatprep.mubr.bf16.mxu0 %v6536_v32  ;;  %4041 = vmatprep.mubr.bf16.mxu1 %v6536_v32  ;;  %v5954_v32 = vld [vmem:[%s8328_s2 + $0x2ac] ss:$16 sps:$4 sm:$0xff]  }
 0x14f   :  { %3807 = vmatpush1.bf16.msra.mxu0 %v5937_v12  ;;  %4059 = vmatpush1.bf16.msra.mxu1 %v5940_v16  ;;  %v6014_v12 = vld [vmem:[%s8328_s2 + $0x3ec] ss:$16 sps:$4 sm:$0xff]   ;;  %v6009_v16 = vld [vmem:[%s8328_s2 + $0x3e0] ss:$16 sps:$4 sm:$0xff]  }
 0x150   :  { %3808 = vmatprep.subr.bf16.mxu0 %v5945_v17  ;;  %4060 = vmatprep.subr.bf16.mxu1 %v5948_v24  ;;  %v6012_v17 = vld [vmem:[%s8328_s2 + $0x3e8] ss:$16 sps:$4 sm:$0xff]   ;;  %v6017_v24 = vld [vmem:[%s8328_s2 + $0x404] ss:$16 sps:$4 sm:$0xff]  }
 0x152   :  { %3790 = vmatmul.mubr.bf16.gmra.mrb[20].mxu0 %v6538_v33  ;;  %4042 = vmatmul.mubr.bf16.gmra.mrb[20].mxu1 %v6538_v33  ;;  %v5960_v33 = vld [vmem:[%s8328_s2 + $0x2cc] ss:$16 sps:$4 sm:$0xff]  }
 0x153   :  { %3809 = vmatpush1.bf16.msra.mxu0 %v5943_v19  ;;  %4061 = vmatpush1.bf16.msra.mxu1 %v5946_v20  ;;  %v6020_v19 = vld [vmem:[%s8328_s2 + $0x40c] ss:$16 sps:$4 sm:$0xff]   ;;  %v6015_v20 = vld [vmem:[%s8328_s2 + $0x400] ss:$16 sps:$4 sm:$0xff]  }
 0x154   :  { %3810 = vmatprep.subr.bf16.mxu0 %v5951_v22  ;;  %4062 = vmatprep.subr.bf16.mxu1 %v5954_v32  ;;  %v6018_v22 = vld [vmem:[%s8328_s2 + $0x408] ss:$16 sps:$4 sm:$0xff]   ;;  %v6023_v32 = vld [vmem:[%s8328_s2 + $0x424] ss:$16 sps:$4 sm:$0xff]  }
 0x155   :  { %3832 = vmatprep.mubr.bf16.mxu0 %v6577_v43  ;;  %4084 = vmatprep.mubr.bf16.mxu1 %v6577_v43  ;;  %v5966_v43 = vld [vmem:[%s8328_s2 + $0x2ec] ss:$16 sps:$4 sm:$0xff]  }
 0x157   :  { %3811 = vmatpush1.bf16.msra.mxu0 %v5949_v26  ;;  %4063 = vmatpush1.bf16.msra.mxu1 %v5952_v27  ;;  %v6026_v26 = vld [vmem:[%s8328_s2 + $0x42c] ss:$16 sps:$4 sm:$0xff]   ;;  %v6021_v27 = vld [vmem:[%s8328_s2 + $0x420] ss:$16 sps:$4 sm:$0xff]  }
 0x158   :  { %3812 = vmatprep.subr.bf16.mxu0 %v5957_v29  ;;  %4064 = vmatprep.subr.bf16.mxu1 %v5960_v33  ;;  %v6024_v29 = vld [vmem:[%s8328_s2 + $0x428] ss:$16 sps:$4 sm:$0xff]   ;;  %v6029_v33 = vld [vmem:[%s8328_s2 + $0x444] ss:$16 sps:$4 sm:$0xff]  }
 0x15b   :  { %3813 = vmatpush1.bf16.msra.mxu0 %v5955_v14  ;;  %4065 = vmatpush1.bf16.msra.mxu1 %v5958_v30  ;;  %v6027_v14 = vld [vmem:[%s8328_s2 + $0x440] ss:$16 sps:$4 sm:$0xff]   ;;  %v6030_v30 = vld [vmem:[%s8328_s2 + $0x448] ss:$16 sps:$4 sm:$0xff]  }
 0x15c   :  { %3814 = vmatprep.subr.bf16.mxu0 %v5963_v31  ;;  %4066 = vmatprep.subr.bf16.mxu1 %v5966_v43  ;;  %v6035_v31 = vld [vmem:[%s8328_s2 + $0x464] ss:$16 sps:$4 sm:$0xff]   ;;  %v6033_v43 = vld [vmem:[%s8328_s2 + $0x460] ss:$16 sps:$4 sm:$0xff]  }
 0x15f   :  { %3815 = vmatpush1.bf16.msra.mxu0 %v5961_v34  ;;  %4067 = vmatpush1.bf16.msra.mxu1 %v5964_v35  ;;  %v6036_v34 = vld [vmem:[%s8328_s2 + $0x468] ss:$16 sps:$4 sm:$0xff]   ;;  %v6041_v35 = vld [vmem:[%s8328_s2 + $0x484] ss:$16 sps:$4 sm:$0xff]  }
 0x160   :  { %3816 = vmatprep.subr.bf16.mxu0 %v5969_v37  ;;  %4068 = vmatprep.subr.bf16.mxu1 %v5972_v38  ;;  %v6039_v37 = vld [vmem:[%s8328_s2 + $0x480] ss:$16 sps:$4 sm:$0xff]   ;;  %v6042_v38 = vld [vmem:[%s8328_s2 + $0x488] ss:$16 sps:$4 sm:$0xff]  }
 0x163   :  { %3817 = vmatpush1.bf16.msra.mxu0 %v5967_v40  ;;  %4069 = vmatpush1.bf16.msra.mxu1 %v5970_v41  ;;  %v6047_v40 = vld [vmem:[%s8328_s2 + $0x4a4] ss:$16 sps:$4 sm:$0xff]   ;;  %v6045_v41 = vld [vmem:[%s8328_s2 + $0x4a0] ss:$16 sps:$4 sm:$0xff]  }
 0x164   :  { %3818 = vmatprep.subr.bf16.mxu0 %v5975_v44  ;;  %4070 = vmatprep.subr.bf16.mxu1 %v5978_v45  ;;  %v6048_v44 = vld [vmem:[%s8328_s2 + $0x4a8] ss:$16 sps:$4 sm:$0xff]   ;;  %v6053_v45 = vld [vmem:[%s8328_s2 + $0x4c4] ss:$16 sps:$4 sm:$0xff]  }
 0x167   :  { %3819 = vmatpush1.bf16.msra.mxu0 %v5973_v47  ;;  %4071 = vmatpush1.bf16.msra.mxu1 %v5976_v52  ;;  %v6051_v47 = vld [vmem:[%s8328_s2 + $0x4c0] ss:$16 sps:$4 sm:$0xff]   ;;  %v6054_v52 = vld [vmem:[%s8328_s2 + $0x4c8] ss:$16 sps:$4 sm:$0xff]  }
 0x168   :  { %3820 = vmatprep.subr.bf16.mxu0 %v5981_v54  ;;  %4072 = vmatprep.subr.bf16.mxu1 %v5984_v55  ;;  %v6059_v54 = vld [vmem:[%s8328_s2 + $0x4e4] ss:$16 sps:$4 sm:$0xff]   ;;  %v6057_v55 = vld [vmem:[%s8328_s2 + $0x4e0] ss:$16 sps:$4 sm:$0xff]  }
 0x16b   :  { %3821 = vmatpush1.bf16.msra.mxu0 %v5979_v48  ;;  %4073 = vmatpush1.bf16.msra.mxu1 %v5982_v58  ;;  %v6060_v48 = vld [vmem:[%s8328_s2 + $0x4e8] ss:$16 sps:$4 sm:$0xff]   ;;  %v6065_v58 = vld [vmem:[%s8328_s2 + $0x504] ss:$16 sps:$4 sm:$0xff]  }
 0x16c   :  { %3822 = vmatprep.subr.bf16.mxu0 %v5987_v59  ;;  %4074 = vmatprep.subr.bf16.mxu1 %v5990_v60  ;;  %v6068_v59 = vld [vmem:[%s8328_s2 + $0x50c] ss:$16 sps:$4 sm:$0xff]   ;;  %v6063_v60 = vld [vmem:[%s8328_s2 + $0x500] ss:$16 sps:$4 sm:$0xff]  }
 0x16f   :  { %3823 = vmatpush1.bf16.msra.mxu0 %v5985_v61  ;;  %4075 = vmatpush1.bf16.msra.mxu1 %v5988_v62  ;;  %v6066_v61 = vld [vmem:[%s8328_s2 + $0x508] ss:$16 sps:$4 sm:$0xff]   ;;  %v6071_v62 = vld [vmem:[%s8328_s2 + $0x524] ss:$16 sps:$4 sm:$0xff]  }
 0x170   :  { %3824 = vmatprep.subr.bf16.mxu0 %v5993_v63  ;;  %4076 = vmatprep.subr.bf16.mxu1 %v5996_v1  ;;  %v6074_v63 = vld [vmem:[%s8328_s2 + $0x52c] ss:$16 sps:$4 sm:$0xff]   ;;  %v6069_v1 = vld [vmem:[%s8328_s2 + $0x520] ss:$16 sps:$4 sm:$0xff]  }
 0x173   :  { %3825 = vmatpush1.bf16.msra.mxu0 %v5991_v2  ;;  %4077 = vmatpush1.bf16.msra.mxu1 %v5994_v3  ;;  %v6072_v2 = vld [vmem:[%s8328_s2 + $0x528] ss:$16 sps:$4 sm:$0xff]   ;;  %v6077_v3 = vld [vmem:[%s8328_s2 + $0x544] ss:$16 sps:$4 sm:$0xff]  }
 0x174   :  { %3826 = vmatprep.subr.bf16.mxu0 %v5999_v4  ;;  %4078 = vmatprep.subr.bf16.mxu1 %v6002_v50  ;;  %v6080_v4 = vld [vmem:[%s8328_s2 + $0x54c] ss:$16 sps:$4 sm:$0xff]   ;;  %v6075_v50 = vld [vmem:[%s8328_s2 + $0x540] ss:$16 sps:$4 sm:$0xff]  }
 0x177   :  { %3827 = vmatpush1.bf16.msra.mxu0 %v5997_v7  ;;  %4079 = vmatpush1.bf16.msra.mxu1 %v6000_v8  ;;  %v6078_v7 = vld [vmem:[%s8328_s2 + $0x548] ss:$16 sps:$4 sm:$0xff]   ;;  %v6083_v8 = vld [vmem:[%s8328_s2 + $0x564] ss:$16 sps:$4 sm:$0xff]  }
 0x178   :  { %3828 = vmatprep.subr.bf16.mxu0 %v6005_v5  ;;  %4080 = vmatprep.subr.bf16.mxu1 %v6008_v9  ;;  %v6086_v5 = vld [vmem:[%s8328_s2 + $0x56c] ss:$16 sps:$4 sm:$0xff]   ;;  %v6081_v9 = vld [vmem:[%s8328_s2 + $0x560] ss:$16 sps:$4 sm:$0xff]  }
 0x17b   :  { %3829 = vmatpush1.bf16.msra.mxu0 %v6003_v10  ;;  %4081 = vmatpush1.bf16.msra.mxu1 %v6006_v11  ;;  %v6084_v10 = vld [vmem:[%s8328_s2 + $0x568] ss:$16 sps:$4 sm:$0xff]   ;;  %v6089_v11 = vld [vmem:[%s8328_s2 + $0x584] ss:$16 sps:$4 sm:$0xff]  }
 0x17c   :  { %3830 = vmatprep.subr.bf16.mxu0 %v6011_v23  ;;  %4082 = vmatprep.subr.bf16.mxu1 %v6014_v12  ;;  %v6092_v23 = vld [vmem:[%s8328_s2 + $0x58c] ss:$16 sps:$4 sm:$0xff]   ;;  %v6087_v12 = vld [vmem:[%s8328_s2 + $0x580] ss:$16 sps:$4 sm:$0xff]  }
 0x17f   :  { %3831 = vmatpush1.bf16.msra.mxu0 %v6009_v16  ;;  %4083 = vmatpush1.bf16.msra.mxu1 %v6012_v17  ;;  %v6090_v16 = vld [vmem:[%s8328_s2 + $0x588] ss:$16 sps:$4 sm:$0xff]   ;;  %v6095_v17 = vld [vmem:[%s8328_s2 + $0x5a4] ss:$16 sps:$4 sm:$0xff]  }
 0x180   :  { %3863 = vmatprep.subr.bf16.mxu0 %v6017_v24  ;;  %4115 = vmatprep.subr.bf16.mxu1 %v6020_v19  ;;  %v6098_v24 = vld [vmem:[%s8328_s2 + $0x5ac] ss:$16 sps:$4 sm:$0xff]   ;;  %v6093_v19 = vld [vmem:[%s8328_s2 + $0x5a0] ss:$16 sps:$4 sm:$0xff]  }
 0x182   :  { %3833 = vmatmul.mubr.bf16.vlgmr.msra.gmra.mrb[12].mxu0 %v6700_v21  ;;  %4085 = vmatmul.mubr.bf16.vlgmr.msra.gmra.mrb[12].mxu1 %v6700_v21  ;;  %v6032_v21 = vld [vmem:[%s8328_s2 + $0x44c] ss:$16 sps:$4 sm:$0xff]  }
 0x183   :  { %3864 = vmatpush1.bf16.msra.mxu0 %v6015_v20  ;;  %4116 = vmatpush1.bf16.msra.mxu1 %v6018_v22  ;;  %v6096_v20 = vld [vmem:[%s8328_s2 + $0x5a8] ss:$16 sps:$4 sm:$0xff]   ;;  %v6101_v22 = vld [vmem:[%s8328_s2 + $0x5c4] ss:$16 sps:$4 sm:$0xff]  }
 0x184   :  { %3865 = vmatprep.subr.bf16.mxu0 %v6023_v32  ;;  %4117 = vmatprep.subr.bf16.mxu1 %v6026_v26  ;;  %v6104_v32 = vld [vmem:[%s8328_s2 + $0x5cc] ss:$16 sps:$4 sm:$0xff]   ;;  %v6099_v26 = vld [vmem:[%s8328_s2 + $0x5c0] ss:$16 sps:$4 sm:$0xff]  }
 0x185   :  { %3842 = vmatprep.mubr.bf16.mxu0 %v6714_v28  ;;  %4094 = vmatprep.mubr.bf16.mxu1 %v6714_v28  ;;  %v6038_v28 = vld [vmem:[%s8328_s2 + $0x46c] ss:$16 sps:$4 sm:$0xff]  }
 0x187   :  { %3866 = vmatpush1.bf16.msra.mxu0 %v6021_v27  ;;  %4118 = vmatpush1.bf16.msra.mxu1 %v6024_v29  ;;  %v6102_v27 = vld [vmem:[%s8328_s2 + $0x5c8] ss:$16 sps:$4 sm:$0xff]   ;;  %v6107_v29 = vld [vmem:[%s8328_s2 + $0x5e4] ss:$16 sps:$4 sm:$0xff]  }
 0x188   :  { %3867 = vmatprep.subr.bf16.mxu0 %v6029_v33  ;;  %4119 = vmatprep.subr.bf16.mxu1 %v6032_v21  ;;  %v6110_v33 = vld [vmem:[%s8328_s2 + $0x5ec] ss:$16 sps:$4 sm:$0xff]   ;;  %v6105_v21 = vld [vmem:[%s8328_s2 + $0x5e0] ss:$16 sps:$4 sm:$0xff]  }
 0x18a   :  { %3843 = vmatmul.mubr.bf16.gmra.mrb[16].mxu0 %v6735_v36  ;;  %4095 = vmatmul.mubr.bf16.gmra.mrb[16].mxu1 %v6735_v36  ;;  %v6044_v36 = vld [vmem:[%s8328_s2 + $0x48c] ss:$16 sps:$4 sm:$0xff]  }
 0x18b   :  { %3868 = vmatpush1.bf16.msra.mxu0 %v6027_v14  ;;  %4120 = vmatpush1.bf16.msra.mxu1 %v6030_v30  ;;  %v6108_v14 = vld [vmem:[%s8328_s2 + $0x5e8] ss:$16 sps:$4 sm:$0xff]   ;;  %v6113_v30 = vld [vmem:[%s8328_s2 + $0x604] ss:$16 sps:$4 sm:$0xff]  }
 0x18c   :  { %3869 = vmatprep.subr.bf16.mxu0 %v6035_v31  ;;  %4121 = vmatprep.subr.bf16.mxu1 %v6038_v28  ;;  %v6116_v31 = vld [vmem:[%s8328_s2 + $0x60c] ss:$16 sps:$4 sm:$0xff]   ;;  %v6111_v28 = vld [vmem:[%s8328_s2 + $0x600] ss:$16 sps:$4 sm:$0xff]  }
 0x18d   :  { %3852 = vmatprep.mubr.bf16.mxu0 %v6752_v42  ;;  %4104 = vmatprep.mubr.bf16.mxu1 %v6752_v42  ;;  %v6050_v42 = vld [vmem:[%s8328_s2 + $0x4ac] ss:$16 sps:$4 sm:$0xff]  }
 0x18f   :  { %3870 = vmatpush1.bf16.msra.mxu0 %v6033_v43  ;;  %4122 = vmatpush1.bf16.msra.mxu1 %v6036_v34  ;;  %v6114_v43 = vld [vmem:[%s8328_s2 + $0x608] ss:$16 sps:$4 sm:$0xff]   ;;  %v6119_v34 = vld [vmem:[%s8328_s2 + $0x624] ss:$16 sps:$4 sm:$0xff]  }
 0x190   :  { %3871 = vmatprep.subr.bf16.mxu0 %v6041_v35  ;;  %4123 = vmatprep.subr.bf16.mxu1 %v6044_v36  ;;  %v6122_v35 = vld [vmem:[%s8328_s2 + $0x62c] ss:$16 sps:$4 sm:$0xff]   ;;  %v6117_v36 = vld [vmem:[%s8328_s2 + $0x620] ss:$16 sps:$4 sm:$0xff]  }
 0x192   :  { %3853 = vmatmul.mubr.bf16.gmra.mrb[20].mxu0 %v6775_v49  ;;  %4105 = vmatmul.mubr.bf16.gmra.mrb[20].mxu1 %v6775_v49  ;;  %v6056_v49 = vld [vmem:[%s8328_s2 + $0x4cc] ss:$16 sps:$4 sm:$0xff]  }
 0x193   :  { %3872 = vmatpush1.bf16.msra.mxu0 %v6039_v37  ;;  %4124 = vmatpush1.bf16.msra.mxu1 %v6042_v38  ;;  %v6120_v37 = vld [vmem:[%s8328_s2 + $0x628] ss:$16 sps:$4 sm:$0xff]   ;;  %v6125_v38 = vld [vmem:[%s8328_s2 + $0x644] ss:$16 sps:$4 sm:$0xff]  }
 0x194   :  { %3873 = vmatprep.subr.bf16.mxu0 %v6047_v40  ;;  %4125 = vmatprep.subr.bf16.mxu1 %v6050_v42  ;;  %v6123_v40 = vld [vmem:[%s8328_s2 + $0x640] ss:$16 sps:$4 sm:$0xff]   ;;  %v6126_v42 = vld [vmem:[%s8328_s2 + $0x648] ss:$16 sps:$4 sm:$0xff]  }
 0x195   :  { %3895 = vmatprep.mubr.bf16.mxu0 %v6796_v56  ;;  %4147 = vmatprep.mubr.bf16.mxu1 %v6796_v56  ;;  %v6062_v56 = vld [vmem:[%s8328_s2 + $0x4ec] ss:$16 sps:$4 sm:$0xff]  }
 0x197   :  { %3874 = vmatpush1.bf16.msra.mxu0 %v6045_v41  ;;  %4126 = vmatpush1.bf16.msra.mxu1 %v6048_v44  ;;  %v6131_v41 = vld [vmem:[%s8328_s2 + $0x664] ss:$16 sps:$4 sm:$0xff]   ;;  %v6129_v44 = vld [vmem:[%s8328_s2 + $0x660] ss:$16 sps:$4 sm:$0xff]  }
 0x198   :  { %3875 = vmatprep.subr.bf16.mxu0 %v6053_v45  ;;  %4127 = vmatprep.subr.bf16.mxu1 %v6056_v49  ;;  %v6132_v45 = vld [vmem:[%s8328_s2 + $0x668] ss:$16 sps:$4 sm:$0xff]   ;;  %v6137_v49 = vld [vmem:[%s8328_s2 + $0x684] ss:$16 sps:$4 sm:$0xff]  }
 0x19b   :  { %3876 = vmatpush1.bf16.msra.mxu0 %v6051_v47  ;;  %4128 = vmatpush1.bf16.msra.mxu1 %v6054_v52  ;;  %v6135_v47 = vld [vmem:[%s8328_s2 + $0x680] ss:$16 sps:$4 sm:$0xff]   ;;  %v6138_v52 = vld [vmem:[%s8328_s2 + $0x688] ss:$16 sps:$4 sm:$0xff]  }
 0x19c   :  { %3877 = vmatprep.subr.bf16.mxu0 %v6059_v54  ;;  %4129 = vmatprep.subr.bf16.mxu1 %v6062_v56  ;;  %v6143_v54 = vld [vmem:[%s8328_s2 + $0x6a4] ss:$16 sps:$4 sm:$0xff]   ;;  %v6141_v56 = vld [vmem:[%s8328_s2 + $0x6a0] ss:$16 sps:$4 sm:$0xff]  }
 0x19f   :  { %3878 = vmatpush1.bf16.msra.mxu0 %v6057_v55  ;;  %4130 = vmatpush1.bf16.msra.mxu1 %v6060_v48  ;;  %v6144_v55 = vld [vmem:[%s8328_s2 + $0x6a8] ss:$16 sps:$4 sm:$0xff]   ;;  %v6149_v48 = vld [vmem:[%s8328_s2 + $0x6c4] ss:$16 sps:$4 sm:$0xff]  }
 0x1a0   :  { %3879 = vmatprep.subr.bf16.mxu0 %v6065_v58  ;;  %4131 = vmatprep.subr.bf16.mxu1 %v6068_v59 }
 0x1a3   :  { %3880 = vmatpush1.bf16.msra.mxu0 %v6063_v60  ;;  %4132 = vmatpush1.bf16.msra.mxu1 %v6066_v61 }
 0x1a4   :  { %3881 = vmatprep.subr.bf16.mxu0 %v6071_v62  ;;  %4133 = vmatprep.subr.bf16.mxu1 %v6074_v63 }
 0x1a7   :  { %3882 = vmatpush1.bf16.msra.mxu0 %v6069_v1  ;;  %4134 = vmatpush1.bf16.msra.mxu1 %v6072_v2  ;;  %v6147_v1 = vld [vmem:[%s8328_s2 + $0x6c0] ss:$16 sps:$4 sm:$0xff]   ;;  %v6150_v2 = vld [vmem:[%s8328_s2 + $0x6c8] ss:$16 sps:$4 sm:$0xff]  }
 0x1a8   :  { %3883 = vmatprep.subr.bf16.mxu0 %v6077_v3  ;;  %4135 = vmatprep.subr.bf16.mxu1 %v6080_v4  ;;  %v6155_v4 = vld [vmem:[%s8328_s2 + $0x6e4] ss:$16 sps:$4 sm:$0xff]  }
 0x1ab   :  { %3884 = vmatpush1.bf16.msra.mxu0 %v6075_v50  ;;  %4136 = vmatpush1.bf16.msra.mxu1 %v6078_v7  ;;  %v6158_v50 = vld [vmem:[%s8328_s2 + $0x6ec] ss:$16 sps:$4 sm:$0xff]   ;;  %v6153_v7 = vld [vmem:[%s8328_s2 + $0x6e0] ss:$16 sps:$4 sm:$0xff]  }
 0x1ac   :  { %3885 = vmatprep.subr.bf16.mxu0 %v6083_v8  ;;  %4137 = vmatprep.subr.bf16.mxu1 %v6086_v5  ;;  %v6156_v8 = vld [vmem:[%s8328_s2 + $0x6e8] ss:$16 sps:$4 sm:$0xff]   ;;  %v6161_v5 = vld [vmem:[%s8328_s2 + $0x704] ss:$16 sps:$4 sm:$0xff]  }
 0x1af   :  { %3886 = vmatpush1.bf16.msra.mxu0 %v6081_v9  ;;  %4138 = vmatpush1.bf16.msra.mxu1 %v6084_v10  ;;  %v6164_v9 = vld [vmem:[%s8328_s2 + $0x70c] ss:$16 sps:$4 sm:$0xff]  }
 0x1b0   :  { %3887 = vmatprep.subr.bf16.mxu0 %v6089_v11  ;;  %4139 = vmatprep.subr.bf16.mxu1 %v6092_v23 }
 0x1b3   :  { %3888 = vmatpush1.bf16.msra.mxu0 %v6087_v12  ;;  %4140 = vmatpush1.bf16.msra.mxu1 %v6090_v16 }
 0x1b4   :  { %3889 = vmatprep.subr.bf16.mxu0 %v6095_v17  ;;  %4141 = vmatprep.subr.bf16.mxu1 %v6098_v24  ;;  %v6159_v24 = vld [vmem:[%s8328_s2 + $0x700] ss:$16 sps:$4 sm:$0xff]  }
 0x1b7   :  { %3890 = vmatpush1.bf16.msra.mxu0 %v6093_v19  ;;  %4142 = vmatpush1.bf16.msra.mxu1 %v6096_v20  ;;  %v6162_v19 = vld [vmem:[%s8328_s2 + $0x708] ss:$16 sps:$4 sm:$0xff]  }
 0x1b8   :  { %3891 = vmatprep.subr.bf16.mxu0 %v6101_v22  ;;  %4143 = vmatprep.subr.bf16.mxu1 %v6104_v32  ;;  %v6167_v32 = vld [vmem:[%s8328_s2 + $0x724] ss:$16 sps:$4 sm:$0xff]  }
 0x1bb   :  { %3892 = vmatpush1.bf16.msra.mxu0 %v6099_v26  ;;  %4144 = vmatpush1.bf16.msra.mxu1 %v6102_v27  ;;  %v6170_v26 = vld [vmem:[%s8328_s2 + $0x72c] ss:$16 sps:$4 sm:$0xff]   ;;  %v6165_v27 = vld [vmem:[%s8328_s2 + $0x720] ss:$16 sps:$4 sm:$0xff]  }
 0x1bc   :  { %3893 = vmatprep.subr.bf16.mxu0 %v6107_v29  ;;  %4145 = vmatprep.subr.bf16.mxu1 %v6110_v33  ;;  %v6168_v29 = vld [vmem:[%s8328_s2 + $0x728] ss:$16 sps:$4 sm:$0xff]   ;;  %v6173_v33 = vld [vmem:[%s8328_s2 + $0x744] ss:$16 sps:$4 sm:$0xff]  }
 0x1bf   :  { %3894 = vmatpush1.bf16.msra.mxu0 %v6105_v21  ;;  %4146 = vmatpush1.bf16.msra.mxu1 %v6108_v14  ;;  %v6176_v21 = vld [vmem:[%s8328_s2 + $0x74c] ss:$16 sps:$4 sm:$0xff]  }
 0x1c0   :  { %3926 = vmatprep.subr.bf16.mxu0 %v6113_v30  ;;  %4178 = vmatprep.subr.bf16.mxu1 %v6116_v31 }
 0x1c2   :  { %3896 = vmatmul.mubr.bf16.vlgmr.msra.gmra.mrb[12].mxu0 %v6942_v53  ;;  %4148 = vmatmul.mubr.bf16.vlgmr.msra.gmra.mrb[12].mxu1 %v6942_v53  ;;  %v6128_v53 = vld [vmem:[%s8328_s2 + $0x64c] ss:$16 sps:$4 sm:$0xff]  }
 0x1c3   :  { %3927 = vmatpush1.bf16.msra.mxu0 %v6111_v28  ;;  %4179 = vmatpush1.bf16.msra.mxu1 %v6114_v43 }
 0x1c4   :  { %3928 = vmatprep.subr.bf16.mxu0 %v6119_v34  ;;  %4180 = vmatprep.subr.bf16.mxu1 %v6122_v35  ;;  %v6171_v35 = vld [vmem:[%s8328_s2 + $0x740] ss:$16 sps:$4 sm:$0xff]  }
 0x1c5   :  { %3905 = vmatprep.mubr.bf16.mxu0 %v6956_v51  ;;  %4157 = vmatprep.mubr.bf16.mxu1 %v6956_v51  ;;  %v6134_v51 = vld [vmem:[%s8328_s2 + $0x66c] ss:$16 sps:$4 sm:$0xff]  }
 0x1c7   :  { %3929 = vmatpush1.bf16.msra.mxu0 %v6117_v36  ;;  %4181 = vmatpush1.bf16.msra.mxu1 %v6120_v37  ;;  %v6174_v36 = vld [vmem:[%s8328_s2 + $0x748] ss:$16 sps:$4 sm:$0xff]  }
 0x1c8   :  { %3930 = vmatprep.subr.bf16.mxu0 %v6125_v38  ;;  %4182 = vmatprep.subr.bf16.mxu1 %v6128_v53  ;;  %v6179_v53 = vld [vmem:[%s8328_s2 + $0x764] ss:$16 sps:$4 sm:$0xff]  }
 0x1ca   :  { %3906 = vmatmul.mubr.bf16.gmra.mrb[16].mxu0 %v6980_v0  ;;  %4158 = vmatmul.mubr.bf16.gmra.mrb[16].mxu1 %v6980_v0  ;;  %v6140_v0 = vld [vmem:[%s8328_s2 + $0x68c] ss:$16 sps:$4 sm:$0xff]  }
 0x1cb   :  { %3931 = vmatpush1.bf16.msra.mxu0 %v6123_v40  ;;  %4183 = vmatpush1.bf16.msra.mxu1 %v6126_v42  ;;  %v6182_v40 = vld [vmem:[%s8328_s2 + $0x76c] ss:$16 sps:$4 sm:$0xff]   ;;  %v6177_v42 = vld [vmem:[%s8328_s2 + $0x760] ss:$16 sps:$4 sm:$0xff]  }
 0x1cc   :  { %3932 = vmatprep.subr.bf16.mxu0 %v6131_v41  ;;  %4184 = vmatprep.subr.bf16.mxu1 %v6134_v51  ;;  %v6180_v41 = vld [vmem:[%s8328_s2 + $0x768] ss:$16 sps:$4 sm:$0xff]   ;;  %v6185_v51 = vld [vmem:[%s8328_s2 + $0x784] ss:$16 sps:$4 sm:$0xff]  }
 0x1cd   :  { %3915 = vmatprep.mubr.bf16.mxu0 %v6994_v6  ;;  %4167 = vmatprep.mubr.bf16.mxu1 %v6994_v6  ;;  %v6146_v6 = vld [vmem:[%s8328_s2 + $0x6ac] ss:$16 sps:$4 sm:$0xff]  }
 0x1cf   :  { %3933 = vmatpush1.bf16.msra.mxu0 %v6129_v44  ;;  %4185 = vmatpush1.bf16.msra.mxu1 %v6132_v45  ;;  %v6188_v44 = vld [vmem:[%s8328_s2 + $0x78c] ss:$16 sps:$4 sm:$0xff]   ;;  %v6183_v45 = vld [vmem:[%s8328_s2 + $0x780] ss:$16 sps:$4 sm:$0xff]  }
 0x1d0   :  { %3934 = vmatprep.subr.bf16.mxu0 %v6137_v49  ;;  %4186 = vmatprep.subr.bf16.mxu1 %v6140_v0  ;;  %v6186_v49 = vld [vmem:[%s8328_s2 + $0x788] ss:$16 sps:$4 sm:$0xff]   ;;  %v6191_v0 = vld [vmem:[%s8328_s2 + $0x7a4] ss:$16 sps:$4 sm:$0xff]  }
 0x1d2   :  { %3916 = vmatmul.mubr.bf16.gmra.mrb[20].mxu0 %v7018_v13  ;;  %4168 = vmatmul.mubr.bf16.gmra.mrb[20].mxu1 %v7018_v13  ;;  %v6152_v13 = vld [vmem:[%s8328_s2 + $0x6cc] ss:$16 sps:$4 sm:$0xff]  }
 0x1d3   :  { %3935 = vmatpush1.bf16.msra.mxu0 %v6135_v47  ;;  %4187 = vmatpush1.bf16.msra.mxu1 %v6138_v52  ;;  %v6194_v47 = vld [vmem:[%s8328_s2 + $0x7ac] ss:$16 sps:$4 sm:$0xff]   ;;  %v6189_v52 = vld [vmem:[%s8328_s2 + $0x7a0] ss:$16 sps:$4 sm:$0xff]  }
 0x1d4   :  { %3936 = vmatprep.subr.bf16.mxu0 %v6143_v54  ;;  %4188 = vmatprep.subr.bf16.mxu1 %v6146_v6  ;;  %v6192_v54 = vld [vmem:[%s8328_s2 + $0x7a8] ss:$16 sps:$4 sm:$0xff]   ;;  %v6197_v6 = vld [vmem:[%s8328_s2 + $0x7c4] ss:$16 sps:$4 sm:$0xff]  }
 0x1d5   :  { %v7894_v58 = vpop.f32.mrb[0].mxu0  ;;  %v7896_v59 = vpop.f32.mrb[0].mxu1  ;;  %3958 = vmatprep.mubr.bf16.mxu0 %v7038_v18  ;;  %4210 = vmatprep.mubr.bf16.mxu1 %v7038_v18 }
 0x1d6   :  { %v7900_v60 = vpop.f32.mrb[1].mxu0  ;;  %v7902_v61 = vpop.f32.mrb[1].mxu1 }
 0x1d7   :  { %v7904_v62 = vpop.f32.mrb[2].mxu0  ;;  %v7906_v63 = vpop.f32.mrb[2].mxu1  ;;  %3937 = vmatpush1.bf16.msra.mxu0 %v6141_v56  ;;  %4189 = vmatpush1.bf16.msra.mxu1 %v6144_v55  ;;  %v6200_v56 = vld [vmem:[%s8328_s2 + $0x7cc] ss:$16 sps:$4 sm:$0xff]   ;;  %v6195_v55 = vld [vmem:[%s8328_s2 + $0x7c0] ss:$16 sps:$4 sm:$0xff]  }
 0x1d8   :  { %v7914_v3 = vpop.f32.mrb[3].mxu0  ;;  %v7916_v18 = vpop.f32.mrb[3].mxu1  ;;  %3938 = vmatprep.subr.bf16.mxu0 %v6149_v48  ;;  %4190 = vmatprep.subr.bf16.mxu1 %v6152_v13  ;;  %v6198_v48 = vld [vmem:[%s8328_s2 + $0x7c8] ss:$16 sps:$4 sm:$0xff]   ;;  %v6203_v13 = vld [vmem:[%s8328_s2 + $0x7e4] ss:$16 sps:$4 sm:$0xff]  }
 0x1db   :  { %3939 = vmatpush1.bf16.msra.mxu0 %v6147_v1  ;;  %4191 = vmatpush1.bf16.msra.mxu1 %v6150_v2  ;;  %v6206_v1 = vld [vmem:[%s8328_s2 + $0x7ec] ss:$16 sps:$4 sm:$0xff]   ;;  %v4329_v2 = vld [vmem:[%s8329_s3 + $0x80] sm:$0xff] }
 0x1dc   :  { %3940 = vmatprep.subr.bf16.mxu0 %v6155_v4  ;;  %4192 = vmatprep.subr.bf16.mxu1 %v6158_v50  ;;  %v4330_v4 = vld [vmem:[%s8329_s3 + $0x88] sm:$0xff]  ;;  %v4361_v50 = vld [vmem:[%s8329_s3 + $0x180] sm:$0xff] }
 0x1dd   :  { %v7936_v10 = vpop.f32.mrb[4].mxu0  ;;  %v7938_v11 = vpop.f32.mrb[4].mxu1 }
 0x1de   :  { %v7940_v23 = vpop.f32.mrb[5].mxu0  ;;  %v7942_v12 = vpop.f32.mrb[5].mxu1 }
 0x1df   :  { %v7944_v16 = vpop.f32.mrb[6].mxu0  ;;  %v7946_v17 = vpop.f32.mrb[6].mxu1  ;;  %3941 = vmatpush1.bf16.msra.mxu0 %v6153_v7  ;;  %4193 = vmatpush1.bf16.msra.mxu1 %v6156_v8  ;;  %v4362_v7 = vld [vmem:[%s8329_s3 + $0x188] sm:$0xff]  ;;  %v6201_v8 = vld [vmem:[%s8328_s2 + $0x7e0] ss:$16 sps:$4 sm:$0xff]  }
 0x1e0   :  { %v7954_v20 = vpop.f32.mrb[7].mxu0  ;;  %v7956_v22 = vpop.f32.mrb[7].mxu1  ;;  %3942 = vmatprep.subr.bf16.mxu0 %v6161_v5  ;;  %4194 = vmatprep.subr.bf16.mxu1 %v6164_v9  ;;  %v6204_v5 = vld [vmem:[%s8328_s2 + $0x7e8] ss:$16 sps:$4 sm:$0xff]   ;;  %v5231_v9 = vpack.c.bf16 %v4330_v4, %v4329_v2  ;;  %v4367_v4 = vld [vmem:[%s8329_s3 + $0x1b0] sm:$0xff] }
 0x1e1   :  { %v4336_v2 = vld [vmem:[%s8329_s3 + $0xb8] sm:$0xff] }
 0x1e3   :  { %3943 = vmatpush1.bf16.msra.mxu0 %v6159_v24  ;;  %4195 = vmatpush1.bf16.msra.mxu1 %v6162_v19  ;;  %v5263_v24 = vpack.c.bf16 %v4362_v7, %v4361_v50  ;;  %v4313_v19 = vld [vmem:[%s8329_s3] sm:$0xff]  ;;  %v4368_v50 = vld [vmem:[%s8329_s3 + $0x1b8] sm:$0xff] }
 0x1e4   :  { %3944 = vmatprep.subr.bf16.mxu0 %v6167_v32  ;;  %4196 = vmatprep.subr.bf16.mxu1 %v6170_v26  ;;  %v4314_v32 = vld [vmem:[%s8329_s3 + $0x8] sm:$0xff]  ;;  %v4345_v26 = vld [vmem:[%s8329_s3 + $0x100] sm:$0xff] }
 0x1e5   :  { %v7976_v14 = vpop.f32.mrb[8].mxu0  ;;  %v7978_v30 = vpop.f32.mrb[8].mxu1 }
 0x1e6   :  { %v7980_v31 = vpop.f32.mrb[9].mxu0  ;;  %v7982_v28 = vpop.f32.mrb[9].mxu1 }
 0x1e7   :  { %v7984_v43 = vpop.f32.mrb[10].mxu0  ;;  %v7986_v34 = vpop.f32.mrb[10].mxu1  ;;  %3945 = vmatpush1.bf16.msra.mxu0 %v6165_v27  ;;  %4197 = vmatpush1.bf16.msra.mxu1 %v6168_v29  ;;  %v4346_v27 = vld [vmem:[%s8329_s3 + $0x108] sm:$0xff]  ;;  %v4331_v29 = vld [vmem:[%s8329_s3 + $0x90] sm:$0xff] }
 0x1e8   :  { %v7994_v37 = vpop.f32.mrb[11].mxu0  ;;  %v7996_v38 = vpop.f32.mrb[11].mxu1  ;;  %3946 = vmatprep.subr.bf16.mxu0 %v6173_v33  ;;  %4198 = vmatprep.subr.bf16.mxu1 %v6176_v21  ;;  %v4332_v33 = vld [vmem:[%s8329_s3 + $0x98] sm:$0xff]  ;;  %v4363_v21 = vld [vmem:[%s8329_s3 + $0x190] sm:$0xff] }
 0x1eb   :  { %3947 = vmatpush1.bf16.msra.mxu0 %v6171_v35  ;;  %4199 = vmatpush1.bf16.msra.mxu1 %v6174_v36  ;;  %v4364_v35 = vld [vmem:[%s8329_s3 + $0x198] sm:$0xff]  ;;  %v5233_v36 = vpack.c.bf16 %v4314_v32, %v4313_v19  ;;  %v5275_v19 = vpack.c.bf16 %v4368_v50, %v4367_v4  ;;  %v4351_v32 = vld [vmem:[%s8329_s3 + $0x130] sm:$0xff] }
 0x1ec   :  { %3948 = vmatprep.subr.bf16.mxu0 %v6179_v53  ;;  %4200 = vmatprep.subr.bf16.mxu1 %v6182_v40  ;;  %v5265_v53 = vpack.c.bf16 %v4346_v27, %v4345_v26  ;;  %v4315_v40 = vld [vmem:[%s8329_s3 + $0x10] sm:$0xff]  ;;  %v4352_v26 = vld [vmem:[%s8329_s3 + $0x138] sm:$0xff]  ;;  %v4337_v27 = vld [vmem:[%s8329_s3 + $0xc0] sm:$0xff] }
 0x1ef   :  { %3949 = vmatpush1.bf16.msra.mxu0 %v6177_v42  ;;  %4201 = vmatpush1.bf16.msra.mxu1 %v6180_v41  ;;  %v4316_v42 = vld [vmem:[%s8329_s3 + $0x18] sm:$0xff]  ;;  %v5235_v41 = vpack.c.bf16 %v4332_v33, %v4331_v29  ;;  %v4338_v29 = vld [vmem:[%s8329_s3 + $0xc8] sm:$0xff]  ;;  %v4369_v33 = vld [vmem:[%s8329_s3 + $0x1c0] sm:$0xff] }
 0x1f0   :  { %3950 = vmatprep.subr.bf16.mxu0 %v6185_v51  ;;  %4202 = vmatprep.subr.bf16.mxu1 %v6188_v44  ;;  %v5267_v51 = vpack.c.bf16 %v4364_v35, %v4363_v21  ;;  %v4347_v44 = vld [vmem:[%s8329_s3 + $0x110] sm:$0xff]  ;;  %v4370_v21 = vld [vmem:[%s8329_s3 + $0x1c8] sm:$0xff] }
 0x1f3   :  { %3951 = vmatpush1.bf16.msra.mxu0 %v6183_v45  ;;  %4203 = vmatpush1.bf16.msra.mxu1 %v6186_v49  ;;  %v4348_v45 = vld [vmem:[%s8329_s3 + $0x118] sm:$0xff]  ;;  %v4333_v49 = vld [vmem:[%s8329_s3 + $0xa0] sm:$0xff] }
 0x1f4   :  { %3952 = vmatprep.subr.bf16.mxu0 %v6191_v0  ;;  %4204 = vmatprep.subr.bf16.mxu1 %v6194_v47  ;;  %v4334_v0 = vld [vmem:[%s8329_s3 + $0xa8] sm:$0xff]  ;;  %v4365_v47 = vld [vmem:[%s8329_s3 + $0x1a0] sm:$0xff] }
 0x1f7   :  { %3953 = vmatpush1.bf16.msra.mxu0 %v6189_v52  ;;  %4205 = vmatpush1.bf16.msra.mxu1 %v6192_v54  ;;  %v4366_v52 = vld [vmem:[%s8329_s3 + $0x1a8] sm:$0xff]  ;;  %v5237_v54 = vpack.c.bf16 %v4316_v42, %v4315_v40  ;;  %v5247_v40 = vpack.c.bf16 %v4338_v29, %v4337_v27  ;;  %v5279_v42 = vpack.c.bf16 %v4370_v21, %v4369_v33  ;;  %v4375_v27 = vld [vmem:[%s8329_s3 + $0x1f0] sm:$0xff]  ;;  %v4376_v33 = vld [vmem:[%s8329_s3 + $0x1f8] sm:$0xff] }
 0x1f8   :  { %3954 = vmatprep.subr.bf16.mxu0 %v6197_v6  ;;  %4206 = vmatprep.subr.bf16.mxu1 %v6200_v56  ;;  %v4317_v6 = vld [vmem:[%s8329_s3 + $0x20] sm:$0xff]  ;;  %v4318_v56 = vld [vmem:[%s8329_s3 + $0x28] sm:$0xff]  ;;  %v4327_v21 = vld [vmem:[%s8329_s3 + $0x70] sm:$0xff] }
 0x1f9   :  { %v5241_v7 = vpack.c.bf16 %v4318_v56, %v4317_v6  ;;  %v4355_v56 = vld [vmem:[%s8329_s3 + $0x150] sm:$0xff] }
 0x1fb   :  { %3955 = vmatpush1.bf16.msra.mxu0 %v6195_v55  ;;  %4207 = vmatpush1.bf16.msra.mxu1 %v6198_v48  ;;  %v5239_v55 = vpack.c.bf16 %v4334_v0, %v4333_v49  ;;  %v5271_v48 = vpack.c.bf16 %v4366_v52, %v4365_v47  ;;  %v4372_v49 = vld [vmem:[%s8329_s3 + $0x1d8] sm:$0xff]  ;;  %v4323_v52 = vld [vmem:[%s8329_s3 + $0x50] sm:$0xff] }
 0x1fc   :  { %3956 = vmatprep.subr.bf16.mxu0 %v6203_v13  ;;  %4208 = vmatprep.subr.bf16.mxu1 %v6206_v1  ;;  %v4350_v13 = vld [vmem:[%s8329_s3 + $0x128] sm:$0xff]  ;;  %v4335_v1 = vld [vmem:[%s8329_s3 + $0xb0] sm:$0xff] }
 0x1ff   :  { %3957 = vmatpush1.bf16.msra.mxu0 %v6201_v8  ;;  %4209 = vmatpush1.bf16.msra.mxu1 %v6204_v5  ;;  %v4319_v5 = vld [vmem:[%s8329_s3 + $0x30] sm:$0xff] }
 0x200   :  { %5232 = vmatprep.subr.bf16.mxu0 %v5231_v9  ;;  %5264 = vmatprep.subr.bf16.mxu1 %v5263_v24  ;;  %v4320_v9 = vld [vmem:[%s8329_s3 + $0x38] sm:$0xff]  ;;  %v5243_v24 = vpack.c.bf16 %v4336_v2, %v4335_v1  ;;  %v4374_v1 = vld [vmem:[%s8329_s3 + $0x1e8] sm:$0xff] }
 0x201   :  { %v5245_v35 = vpack.c.bf16 %v4320_v9, %v4319_v5  ;;  %v4357_v5 = vld [vmem:[%s8329_s3 + $0x160] sm:$0xff] }
 0x202   :  { %3959 = vmatmul.mubr.bf16.vlgmr.msra.gmra.mrb[12].mxu0 %v7184_v25  ;;  %4211 = vmatmul.mubr.bf16.vlgmr.msra.gmra.mrb[12].mxu1 %v7184_v25  ;;  %v5269_v25 = vpack.c.bf16 %v4348_v45, %v4347_v44  ;;  %v4340_v44 = vld [vmem:[%s8329_s3 + $0xd8] sm:$0xff]  ;;  %v4371_v45 = vld [vmem:[%s8329_s3 + $0x1d0] sm:$0xff] }
 0x203   :  { %3968 = vmatprep.mubr.bf16.mxu0 %v7198_v15  ;;  %4220 = vmatprep.mubr.bf16.mxu1 %v7198_v15  ;;  %v4349_v15 = vld [vmem:[%s8329_s3 + $0x120] sm:$0xff]  ;;  %v5283_v6 = vpack.c.bf16 %v4372_v49, %v4371_v45 }
 0x204   :  { %5234 = vmatpush3.bf16.msra.mxu0 %v5233_v36  ;;  %5266 = vmatpush3.bf16.msra.mxu1 %v5265_v53  ;;  %v5273_v8 = vpack.c.bf16 %v4350_v13, %v4349_v15  ;;  %v4321_v36 = vld [vmem:[%s8329_s3 + $0x40] sm:$0xff]  ;;  %v4322_v53 = vld [vmem:[%s8329_s3 + $0x48] sm:$0xff] }
 0x205   :  { %5236 = vmatprep.subr.bf16.mxu0 %v5235_v41  ;;  %5268 = vmatprep.subr.bf16.mxu1 %v5267_v51  ;;  %v4354_v41 = vld [vmem:[%s8329_s3 + $0x148] sm:$0xff]  ;;  %v4339_v51 = vld [vmem:[%s8329_s3 + $0xd0] sm:$0xff]  ;;  %v5249_v0 = vpack.c.bf16 %v4322_v53, %v4321_v36  ;;  %v4373_v13 = vld [vmem:[%s8329_s3 + $0x1e0] sm:$0xff] }
 0x206   :  { %v4342_v15 = vld [vmem:[%s8329_s3 + $0xe8] sm:$0xff]  ;;  %v4359_v53 = vld [vmem:[%s8329_s3 + $0x170] sm:$0xff] }
 0x208   :  { %5238 = vmatpush3.bf16.msra.mxu0 %v5237_v54  ;;  %5270 = vmatpush3.bf16.msra.mxu1 %v5269_v25  ;;  %v4324_v54 = vld [vmem:[%s8329_s3 + $0x58] sm:$0xff]  ;;  %v5251_v25 = vpack.c.bf16 %v4340_v44, %v4339_v51  ;;  %v4242_v51 = vmul.f32 %v7900_v60, %v7900_v60  ;;  %v4244_v44 = vmul.f32 %v7902_v61, %v7902_v61 }
 0x209   :  { %5240 = vmatprep.subr.bf16.mxu0 %v5239_v55  ;;  %5272 = vmatprep.subr.bf16.mxu1 %v5271_v48  ;;  %v4356_v55 = vld [vmem:[%s8329_s3 + $0x158] sm:$0xff]  ;;  %v4341_v48 = vld [vmem:[%s8329_s3 + $0xe0] sm:$0xff]  ;;  %v5253_v2 = vpack.c.bf16 %v4324_v54, %v4323_v52  ;;  %v4248_v60 = vmul.f32 %v7916_v18, %v7916_v18  ;;  %v4249_v18 = vmul.f32 %v7936_v10, %v7936_v10 }
 0x20a   :  { %3969 = vmatmul.mubr.bf16.gmra.mrb[16].mxu0 %v7222_v39  ;;  %4221 = vmatmul.mubr.bf16.gmra.mrb[16].mxu1 %v7222_v39  ;;  %v5277_v39 = vpack.c.bf16 %v4352_v26, %v4351_v32  ;;  %v5285_v4 = vpack.c.bf16 %v4356_v55, %v4355_v56  ;;  %v5255_v50 = vpack.c.bf16 %v4342_v15, %v4341_v48  ;;  %v4343_v32 = vld [vmem:[%s8329_s3 + $0xf0] sm:$0xff]  ;;  %v4344_v26 = vld [vmem:[%s8329_s3 + $0xf8] sm:$0xff] }
 0x20b   :  { %3978 = vmatprep.mubr.bf16.mxu0 %v7236_v46  ;;  %4230 = vmatprep.mubr.bf16.mxu1 %v7236_v46  ;;  %v4353_v46 = vld [vmem:[%s8329_s3 + $0x140] sm:$0xff]  ;;  %v5259_v29 = vpack.c.bf16 %v4344_v26, %v4343_v32  ;;  %v4255_v10 = vmul.f32 %v7946_v17, %v7946_v17 }
 0x20c   :  { %5242 = vmatpush3.bf16.msra.mxu0 %v5241_v7  ;;  %5274 = vmatpush3.bf16.msra.mxu1 %v5273_v8  ;;  %v5281_v47 = vpack.c.bf16 %v4354_v41, %v4353_v46  ;;  %v4325_v7 = vld [vmem:[%s8329_s3 + $0x60] sm:$0xff]  ;;  %v4326_v8 = vld [vmem:[%s8329_s3 + $0x68] sm:$0xff]  ;;  %v4241_v46 = vmul.f32 %v7894_v58, %v7894_v58  ;;  %v4243_v41 = vmul.f32 %v7896_v59, %v7896_v59 }
 0x20d   :  { %5244 = vmatprep.subr.bf16.mxu0 %v5243_v24  ;;  %5276 = vmatprep.subr.bf16.mxu1 %v5275_v19  ;;  %v5257_v9 = vpack.c.bf16 %v4326_v8, %v4325_v7  ;;  %v4358_v24 = vld [vmem:[%s8329_s3 + $0x168] sm:$0xff]  ;;  %v4246_v59 = vmul.f32 %v7914_v3, %v7914_v3 }
 0x20e   :  { %v5289_v19 = vpack.c.bf16 %v4358_v24, %v4357_v5  ;;  %v4250_v24 = vmul.f32 %v7940_v23, %v7940_v23  ;;  %v4254_v23 = vmul.f32 %v7954_v20, %v7954_v20 }
 0x210   :  { %5246 = vmatpush3.bf16.msra.mxu0 %v5245_v35  ;;  %5278 = vmatpush3.bf16.msra.mxu1 %v5277_v39  ;;  %v4328_v35 = vld [vmem:[%s8329_s3 + $0x78] sm:$0xff]  ;;  %v5291_v39 = vpack.c.bf16 %v4376_v33, %v4375_v27  ;;  %v4253_v27 = vmul.f32 %v7944_v16, %v7944_v16 }
 0x211   :  { %5248 = vmatprep.subr.bf16.mxu0 %v5247_v40  ;;  %5280 = vmatprep.subr.bf16.mxu1 %v5279_v42  ;;  %v5261_v36 = vpack.c.bf16 %v4328_v35, %v4327_v21  ;;  %v4360_v40 = vld [vmem:[%s8329_s3 + $0x178] sm:$0xff] }
 0x212   :  { %3979 = vmatmul.mubr.bf16.gmra.mrb[20].mxu0 %v7254_v57  ;;  %4231 = vmatmul.mubr.bf16.gmra.mrb[20].mxu1 %v7254_v57  ;;  %v5287_v57 = vpack.c.bf16 %v4374_v1, %v4373_v13  ;;  %v5293_v42 = vpack.c.bf16 %v4360_v40, %v4359_v53 }
 0x214   :  { %5250 = vmatpush3.bf16.msra.mxu0 %v5249_v0  ;;  %5282 = vmatpush3.bf16.msra.mxu1 %v5281_v47  ;;  %v4245_v0 = vmul.f32 %v7904_v62, %v7904_v62  ;;  %v4247_v47 = vmul.f32 %v7906_v63, %v7906_v63 }
 0x215   :  { %5252 = vmatprep.subr.bf16.mxu0 %v5251_v25  ;;  %5284 = vmatprep.subr.bf16.mxu1 %v5283_v6 }
 0x218   :  { %5254 = vmatpush3.bf16.msra.mxu0 %v5253_v2  ;;  %5286 = vmatpush3.bf16.msra.mxu1 %v5285_v4 }
 0x219   :  { %5256 = vmatprep.subr.bf16.mxu0 %v5255_v50  ;;  %5288 = vmatprep.subr.bf16.mxu1 %v5287_v57 }
 0x21c   :  { %5258 = vmatpush3.bf16.msra.mxu0 %v5257_v9  ;;  %5290 = vmatpush3.bf16.msra.mxu1 %v5289_v19  ;;  %v4251_v9 = vmul.f32 %v7938_v11, %v7938_v11  ;;  %v4252_v19 = vmul.f32 %v7942_v12, %v7942_v12  ;;  %v4256_v12 = vmul.f32 %v7956_v22, %v7956_v22 }
 0x21d   :  { %5260 = vmatprep.subr.bf16.mxu0 %v5259_v29  ;;  %5292 = vmatprep.subr.bf16.mxu1 %v5291_v39 }
 0x220   :  { %5262 = vmatpush3.bf16.msra.mxu0 %v5261_v36  ;;  %5294 = vmatpush3.bf16.msra.mxu1 %v5293_v42 }
 0x2d5   :  { %v3960_v45 = vpop.f32.mrb[12].mxu0  ;;  %v4212_v49 = vpop.f32.mrb[12].mxu1 }
 0x2d6   :  { %v4265_v52 = vmul.f32 %v3960_v45, %v3960_v45  ;;  %v4267_v54 = vmul.f32 %v4212_v49, %v4212_v49  ;;  %v3962_v58 = vpop.f32.mrb[13].mxu0  ;;  %v4214_v25 = vpop.f32.mrb[13].mxu1 }
 0x2d7   :  { %v4266_v6 = vmul.f32 %v3962_v58, %v3962_v58  ;;  %v4268_v61 = vmul.f32 %v4214_v25, %v4214_v25  ;;  %v3964_v56 = vpop.f32.mrb[14].mxu0  ;;  %v4216_v55 = vpop.f32.mrb[14].mxu1  ;;  %v4258_v58 = vmul.f32 %v7980_v31, %v7980_v31  ;;  %v4260_v25 = vmul.f32 %v7982_v28, %v7982_v28 }
 0x2d8   :  { %v4289_v48 = vadd.f32 %v4265_v52, %v4241_v46  ;;  %v4291_v15 = vadd.f32 %v4267_v54, %v4243_v41  ;;  %v4269_v62 = vmul.f32 %v3964_v56, %v3964_v56  ;;  %v4271_v13 = vmul.f32 %v4216_v55, %v4216_v55  ;;  %v3966_v1 = vpop.f32.mrb[15].mxu0  ;;  %v4218_v63 = vpop.f32.mrb[15].mxu1 }
 0x2d9   :  { %v4290_v2 = vadd.f32 %v4266_v6, %v4242_v51  ;;  %v4292_v4 = vadd.f32 %v4268_v61, %v4244_v44  ;;  %v4270_v50 = vmul.f32 %v3966_v1, %v3966_v1  ;;  %v4272_v57 = vmul.f32 %v4218_v63, %v4218_v63 }
 0x2da   :  { %v4293_v7 = vadd.f32 %v4269_v62, %v4245_v0  ;;  %v4295_v8 = vadd.f32 %v4271_v13, %v4247_v47  ;;  %v4257_v52 = vmul.f32 %v7976_v14, %v7976_v14  ;;  %v4259_v54 = vmul.f32 %v7978_v30, %v7978_v30 }
 0x2db   :  { %v4294_v3 = vadd.f32 %v4270_v50, %v4246_v59  ;;  %v4296_v5 = vadd.f32 %v4272_v57, %v4248_v60  ;;  %4441 = vmatprep.mubr.f32.mxu0 %v4290_v2  ;;  %4536 = vmatprep.mubr.f32.mxu1 %v4292_v4  ;;  %v4261_v6 = vmul.f32 %v7984_v43, %v7984_v43 }
 0x2dc   :  { %4442 = vmatmul.mubr.f32.vlgmr.msra.gmra.mrb[24].mxu0 %v4289_v48  ;;  %4537 = vmatmul.mubr.f32.vlgmr.msra.gmra.mrb[24].mxu1 %v4291_v15  ;;  %v4263_v14 = vmul.f32 %v7986_v34, %v7986_v34  ;;  %v4262_v31 = vmul.f32 %v7994_v37, %v7994_v37  ;;  %v4264_v28 = vmul.f32 %v7996_v38, %v7996_v38 }
 0x2dd   :  { %v3970_v32 = vpop.f32.mrb[16].mxu0  ;;  %v4222_v26 = vpop.f32.mrb[16].mxu1  ;;  %4446 = vmatprep.mubr.f32.mxu0 %v4294_v3  ;;  %4541 = vmatprep.mubr.f32.mxu1 %v4296_v5 }
 0x2de   :  { %v4273_v29 = vmul.f32 %v3970_v32, %v3970_v32  ;;  %v4275_v33 = vmul.f32 %v4222_v26, %v4222_v26  ;;  %v3972_v21 = vpop.f32.mrb[17].mxu0  ;;  %v4224_v11 = vpop.f32.mrb[17].mxu1 }
 0x2df   :  { %v4274_v35 = vmul.f32 %v3972_v21, %v3972_v21  ;;  %v4276_v39 = vmul.f32 %v4224_v11, %v4224_v11  ;;  %v3974_v36 = vpop.f32.mrb[18].mxu0  ;;  %v4226_v53 = vpop.f32.mrb[18].mxu1 }
 0x2e0   :  { %v4297_v40 = vadd.f32 %v4273_v29, %v4249_v18  ;;  %v4299_v42 = vadd.f32 %v4275_v33, %v4251_v9  ;;  %v4277_v16 = vmul.f32 %v3974_v36, %v3974_v36  ;;  %v4279_v46 = vmul.f32 %v4226_v53, %v4226_v53  ;;  %v3976_v41 = vpop.f32.mrb[19].mxu0  ;;  %v4228_v17 = vpop.f32.mrb[19].mxu1  ;;  %4447 = vmatmul.mubr.f32.gmra.mrb[26].mxu0 %v4293_v7 }
 0x2e1   :  { %v4298_v51 = vadd.f32 %v4274_v35, %v4250_v24  ;;  %v4300_v44 = vadd.f32 %v4276_v39, %v4252_v19  ;;  %v4278_v45 = vmul.f32 %v3976_v41, %v3976_v41  ;;  %v4280_v49 = vmul.f32 %v4228_v17, %v4228_v17  ;;  %4542 = vmatmul.mubr.f32.gmra.mrb[26].mxu1 %v4295_v8 }
 0x2e2   :  { %v4301_v20 = vadd.f32 %v4277_v16, %v4253_v27  ;;  %v4303_v0 = vadd.f32 %v4279_v46, %v4255_v10 }
 0x2e3   :  { %v4302_v47 = vadd.f32 %v4278_v45, %v4254_v23  ;;  %v4304_v22 = vadd.f32 %v4280_v49, %v4256_v12  ;;  %4451 = vmatprep.mubr.f32.mxu0 %v4298_v51  ;;  %4546 = vmatprep.mubr.f32.mxu1 %v4300_v44 }
 0x2e4   :  { %4452 = vmatmul.mubr.f32.gmra.mrb[28].mxu0 %v4297_v40 }
 0x2e5   :  { %4547 = vmatmul.mubr.f32.gmra.mrb[28].mxu1 %v4299_v42  ;;  %v3980_v59 = vpop.f32.mrb[20].mxu0  ;;  %v4232_v60 = vpop.f32.mrb[20].mxu1  ;;  %4456 = vmatprep.mubr.f32.mxu0 %v4302_v47 }
 0x2e6   :  { %v4281_v61 = vmul.f32 %v3980_v59, %v3980_v59  ;;  %v4283_v56 = vmul.f32 %v4232_v60, %v4232_v60  ;;  %4551 = vmatprep.mubr.f32.mxu1 %v4304_v22  ;;  %v3982_v30 = vpop.f32.mrb[21].mxu0  ;;  %v4234_v55 = vpop.f32.mrb[21].mxu1 }
 0x2e7   :  { %v4282_v48 = vmul.f32 %v3982_v30, %v3982_v30  ;;  %v4284_v15 = vmul.f32 %v4234_v55, %v4234_v55  ;;  %v3984_v62 = vpop.f32.mrb[22].mxu0  ;;  %v4236_v13 = vpop.f32.mrb[22].mxu1 }
 0x2e8   :  { %v4305_v1 = vadd.f32 %v4281_v61, %v4257_v52  ;;  %v4307_v43 = vadd.f32 %v4283_v56, %v4259_v54  ;;  %v4285_v63 = vmul.f32 %v3984_v62, %v3984_v62  ;;  %v4287_v2 = vmul.f32 %v4236_v13, %v4236_v13  ;;  %v3986_v34 = vpop.f32.mrb[23].mxu0  ;;  %v4238_v4 = vpop.f32.mrb[23].mxu1  ;;  %4457 = vmatmul.mubr.f32.gmra.mrb[30].mxu0 %v4301_v20 }
 0x2e9   :  { %v4306_v50 = vadd.f32 %v4282_v48, %v4258_v58  ;;  %v4308_v57 = vadd.f32 %v4284_v15, %v4260_v25  ;;  %v4286_v7 = vmul.f32 %v3986_v34, %v3986_v34  ;;  %v4288_v8 = vmul.f32 %v4238_v4, %v4238_v4  ;;  %4552 = vmatmul.mubr.f32.gmra.mrb[30].mxu1 %v4303_v0 }
 0x2ea   :  { %v4309_v37 = vadd.f32 %v4285_v63, %v4261_v6  ;;  %v4311_v3 = vadd.f32 %v4287_v2, %v4263_v14 }
 0x2eb   :  { %v4310_v5 = vadd.f32 %v4286_v7, %v4262_v31  ;;  %v4312_v38 = vadd.f32 %v4288_v8, %v4264_v28  ;;  %4461 = vmatprep.mubr.f32.mxu0 %v4306_v50  ;;  %4556 = vmatprep.mubr.f32.mxu1 %v4308_v57 }
 0x2ec   :  { %4462 = vmatmul.mubr.f32.gmra.mrb[32].mxu0 %v4305_v1 }
 0x2ed   :  { %4557 = vmatmul.mubr.f32.gmra.mrb[32].mxu1 %v4307_v43  ;;  %4466 = vmatprep.mubr.f32.mxu0 %v4310_v5 }
 0x2ee   :  { %4561 = vmatprep.mubr.f32.mxu1 %v4312_v38 }
 0x2f0   :  { %4467 = vmatmul.mubr.f32.gmra.mrb[34].mxu0 %v4309_v37 }
 0x2f1   :  { %4562 = vmatmul.mubr.f32.gmra.mrb[34].mxu1 %v4311_v3 }
 0x3af   :  { %v5163_v18 = vpop.f32.mrb[24].mxu0  ;;  %v5213_v9 = vpop.f32.mrb[24].mxu1 }
 0x3b0   :  { %v5164_v24 = vpop.f32.mrb[25].mxu0  ;;  %v5214_v19 = vpop.f32.mrb[25].mxu1 }
 0x3b1   :  { %v5165_v32 = vadd.f32 %v5164_v24, %v5163_v18  ;;  %v5215_v26 = vadd.f32 %v5214_v19, %v5213_v9 }
 0x3b3   :  { %v4539_v27 = vadd.f32 %v5215_v26, %v5165_v32  ;;  %v5166_v10 = vpop.f32.mrb[26].mxu0 }
 0x3b4   :  { %v5216_v29 = vpop.f32.mrb[26].mxu1  ;;  %v5167_v33 = vpop.f32.mrb[27].mxu0 }
 0x3b5   :  { %v4567_v21 = vmax.f32 %v4539_v27, 1e-05  ;;  %v5168_v11 = vadd.f32 %v5167_v33, %v5166_v10  ;;  %v5217_v23 = vpop.f32.mrb[27].mxu1 }
 0x3b6   :  { %v5218_v12 = vadd.f32 %v5217_v23, %v5216_v29 }
 0x3b7   :  { %6207 = vlog2.f32 %v4567_v21  ;;  %v5169_v35 = vpop.f32.mrb[28].mxu0 }
 0x3b8   :  { %v4544_v39 = vadd.f32 %v5218_v12, %v5168_v11  ;;  %v5219_v36 = vpop.f32.mrb[28].mxu1  ;;  %v5170_v53 = vpop.f32.mrb[29].mxu0 }
 0x3b9   :  { %v5171_v40 = vadd.f32 %v5170_v53, %v5169_v35  ;;  %v5220_v42 = vpop.f32.mrb[29].mxu1 }
 0x3ba   :  { %v4568_v16 = vmax.f32 %v4544_v39, 1e-05  ;;  %v5221_v46 = vadd.f32 %v5220_v42, %v5219_v36 }
 0x3bb   :  { %v5172_v41 = vpop.f32.mrb[30].mxu0 }
 0x3bc   :  { %6209 = vlog2.f32 %v4568_v16  ;;  %v4549_v17 = vadd.f32 %v5221_v46, %v5171_v40  ;;  %v5222_v51 = vpop.f32.mrb[30].mxu1  ;;  %v5173_v44 = vpop.f32.mrb[31].mxu0 }
 0x3bd   :  { %v5174_v45 = vadd.f32 %v5173_v44, %v5172_v41  ;;  %v5223_v49 = vpop.f32.mrb[31].mxu1 }
 0x3be   :  { %v4569_v20 = vmax.f32 %v4549_v17, 1e-05  ;;  %v5224_v0 = vadd.f32 %v5223_v49, %v5222_v51 }
 0x3bf   :  { %v5175_v47 = vpop.f32.mrb[32].mxu0 }
 0x3c0   :  { %6211 = vlog2.f32 %v4569_v20  ;;  %v4554_v22 = vadd.f32 %v5224_v0, %v5174_v45  ;;  %v5225_v52 = vpop.f32.mrb[32].mxu1  ;;  %v5176_v54 = vpop.f32.mrb[33].mxu0 }
 0x3c1   :  { %v6208_v58 = vpop.eup %6207  ;;  %v5177_v25 = vadd.f32 %v5176_v54, %v5175_v47  ;;  %v5226_v59 = vpop.f32.mrb[33].mxu1 }
 0x3c2   :  { %v4574_v60 = vmul.f32 0.6931472, %v6208_v58  ;;  %v4570_v6 = vmax.f32 %v4554_v22, 1e-05  ;;  %v5227_v14 = vadd.f32 %v5226_v59, %v5225_v52 }
 0x3c3   :  { %v5178_v61 = vpop.f32.mrb[34].mxu0 }
 0x3c4   :  { %4585 = vst [vmem:[%s8330_s4] sm:$0xff] %v4574_v60  ;;  %6213 = vlog2.f32 %v4570_v6  ;;  %v4559_v56 = vadd.f32 %v5227_v14, %v5177_v25  ;;  %v5228_v30 = vpop.f32.mrb[34].mxu1  ;;  %v5179_v55 = vpop.f32.mrb[35].mxu0 }
 0x3c5   :  { %v5180_v31 = vadd.f32 %v5179_v55, %v5178_v61  ;;  %v5229_v28 = vpop.f32.mrb[35].mxu1 }
 0x3c6   :  { %v6210_v48 = vpop.eup %6209  ;;  %v4571_v15 = vmax.f32 %v4559_v56, 1e-05  ;;  %v5230_v62 = vadd.f32 %v5229_v28, %v5228_v30 }
 0x3c7   :  { %v4576_v13 = vmul.f32 0.6931472, %v6210_v48 }
 0x3c8   :  { %6215 = vlog2.f32 %v4571_v15  ;;  %v4564_v1 = vadd.f32 %v5230_v62, %v5180_v31 }
 0x3c9   :  { %4586 = vst [vmem:[%s8330_s4 + $0x8] sm:$0xff] %v4576_v13 }
 0x3ca   :  { %v6212_v43 = vpop.eup %6211  ;;  %v4572_v63 = vmax.f32 %v4564_v1, 1e-05 }
 0x3cb   :  { %v4578_v2 = vmul.f32 0.6931472, %v6212_v43 }
 0x3cc   :  { %6217 = vlog2.f32 %v4572_v63 }
 0x3cd   :  { %4587 = vst [vmem:[%s8330_s4 + $0x10] sm:$0xff] %v4578_v2 }
 0x3ce   :  { %v6214_v34 = vpop.eup %6213 }
 0x3cf   :  { %v4580_v4 = vmul.f32 0.6931472, %v6214_v34 }
 0x3d1   :  { %4588 = vst [vmem:[%s8330_s4 + $0x18] sm:$0xff] %v4580_v4 }
 0x3d2   :  { %v6216_v50 = vpop.eup %6215 }
 0x3d3   :  { %v4582_v57 = vmul.f32 0.6931472, %v6216_v50 }
 0x3d5   :  { %4589 = vst [vmem:[%s8330_s4 + $0x20] sm:$0xff] %v4582_v57 }
 0x3d6   :  { %v6218_v7 = vpop.eup %6217 }
 0x3d7   :  { %v4584_v8 = vmul.f32 0.6931472, %v6218_v7 }
 0x3d9   :  { %4590 = vst [vmem:[%s8330_s4 + $0x28] sm:$0xff] %v4584_v8 }

</bundles_post_ra>
